<compile_context>
chip_gen: v7x
topology: tpu7x:2x2x1
jax: 0.10.0
libtpu: 0.0.40
codegen_flags: <defaults>
</compile_context>

<pallas_src>
import functools

import jax
import jax.numpy as jnp
from jax.experimental import pallas as pl
from jax.experimental.pallas import tpu as pltpu

_EPS = 1e-5  # BatchNorm2d(..., eps=1e-05)


def bn_relu_kernel(x_ref, gamma_ref, beta_ref, o_ref, *, chunk):
    # x_ref:     (N, CB, HW) f32 -- CB channels on sublanes, HW on lanes
    # gamma_ref: (1, CB, 1)  f32
    # beta_ref:  (1, CB, 1)  f32
    n, cb, hw = x_ref.shape
    inv_m = 1.0 / (n * hw)  # static constant
    num_chunks = cb // chunk

    # Process `chunk` channels (sublane rows) at a time so only a small slice
    # of the tile is ever live in vregs: stats pass, then re-read for apply.
    for ci in range(num_chunks):
        sl = slice(ci * chunk, (ci + 1) * chunk)  # static slice: zero runtime cost

        xc = x_ref[:, sl, :]                                   # (N, chunk, HW)
        s = jnp.sum(xc, axis=(0, 2), keepdims=True)            # (1, chunk, 1)
        ss = jnp.sum(xc * xc, axis=(0, 2), keepdims=True)      # (1, chunk, 1)

        mean = s * inv_m
        # Clamp: one-pass E[x^2]-mean^2 can undershoot 0 from f32 cancellation.
        var = jnp.maximum(ss * inv_m - mean * mean, 0.0)
        inv_std = jax.lax.rsqrt(var + _EPS)                    # EUP

        # Fold normalization + affine into per-channel scale/shift.
        scale = gamma_ref[:, sl, :] * inv_std                  # (1, chunk, 1)
        shift = beta_ref[:, sl, :] - mean * scale              # (1, chunk, 1)

        # Re-read this chunk of x from VMEM for the cheap elementwise pass.
        o_ref[:, sl, :] = jnp.maximum(x_ref[:, sl, :] * scale + shift, 0.0)


def batchnorm_relu(x_nchw, gamma, beta, *, c_block=None):
    """Training-mode BatchNorm2d + ReLU.  x_nchw: (N,C,H,W) f32; gamma,beta: (C,) f32."""
    N, C, H, W = x_nchw.shape
    HW = H * W

    # Free reshapes: NCHW is contiguous as (N, C, H*W); no transpose kernels.
    x3d = x_nchw.reshape(N, C, HW)
    g3d = gamma.reshape(1, C, 1)
    b3d = beta.reshape(1, C, 1)

    # Default: single block over all channels (grid=(1,)) -- the tensor is tiny
    # and extra grid steps are pure per-step overhead on single-TC chips.
    if c_block is None or C % c_block != 0:
        cb = C
    else:
        cb = c_block
    grid = (C // cb,)

    # In-kernel channel-chunk size (sublane rows); must divide cb and be a
    # multiple of 8 for aligned static slices.  Fall back to cb otherwise.
    chunk = cb
    for cand in (32, 16, 8):
        if cb % cand == 0:
            chunk = cand
            break

    # Only request a cross-TC split when there is actually more than one step.
    sem = ("parallel",) if grid[0] > 1 else ("arbitrary",)

    out3d = pl.pallas_call(
        functools.partial(bn_relu_kernel, chunk=chunk),
        out_shape=jax.ShapeDtypeStruct((N, C, HW), jnp.float32),
        grid_spec=pltpu.PrefetchScalarGridSpec(
            num_scalar_prefetch=0,
            grid=grid,
            in_specs=[
                pl.BlockSpec((N, cb, HW), lambda i: (0, i, 0)),
                pl.BlockSpec((1, cb, 1), lambda i: (0, i, 0)),
                pl.BlockSpec((1, cb, 1), lambda i: (0, i, 0)),
            ],
            out_specs=pl.BlockSpec((N, cb, HW), lambda i: (0, i, 0)),
        ),
        compiler_params=pltpu.CompilerParams(dimension_semantics=sem),
    )(x3d, g3d, b3d)

    return out3d.reshape(N, C, H, W)


if __name__ == "__main__":
    key = jax.random.PRNGKey(0)
    kx, kg, kb = jax.random.split(key, 3)

    # Shapes implied by the module: BatchNorm2d(256) on a (1, 256, 14, 14) input.
    N, C, H, W = 1, 256, 14, 14
    x = jax.random.normal(kx, (N, C, H, W), dtype=jnp.float32)

    # Deterministic, non-trivial affine parameters so the affine path is exercised.
    gamma = 1.0 + 0.1 * jax.random.normal(kg, (C,), dtype=jnp.float32)
    beta = 0.1 * jax.random.normal(kb, (C,), dtype=jnp.float32)

    out = batchnorm_relu(x, gamma, beta)
    out = jax.block_until_ready(out)

    # Pure-JAX reference (training-mode batchnorm with biased variance + relu).
    mean = jnp.mean(x, axis=(0, 2, 3), keepdims=True)
    var = jnp.mean((x - mean) ** 2, axis=(0, 2, 3), keepdims=True)
    ref = (x - mean) / jnp.sqrt(var + _EPS)
    ref = ref * gamma.reshape(1, C, 1, 1) + beta.reshape(1, C, 1, 1)
    ref = jnp.maximum(ref, 0.0)

    assert out.shape == (N, C, H, W)
    # one-pass E[x^2]-mean^2 variance is marginally less robust than the
    # centered form; slightly looser atol covers the f32 difference.
    assert jnp.allclose(out, ref, atol=1e-4, rtol=1e-5), "mismatch vs reference"

    print("KERNEL_OK")
</pallas_src>

<mosaic_0001>
module attributes {stable_mosaic.version = 11 : i64} {
  func.func @bn_relu_kernel(%arg0: i32, %arg1: memref<1x256x196xf32, #tpu.memory_space<vmem>>, %arg2: memref<1x256x1xf32, #tpu.memory_space<vmem>>, %arg3: memref<1x256x1xf32, #tpu.memory_space<vmem>>, %arg4: memref<1x256x196xf32, #tpu.memory_space<vmem>>) attributes {dimension_semantics = [#tpu.dimension_semantics<arbitrary>], iteration_bounds = array<i64: 1>, scalar_prefetch = 0 : i64, scratch_operands = 0 : i64, tpu.core_type = #tpu.core_type<tc>, window_params = [{transform_indices = @transform_0, window_bounds = array<i64: 1, 256, 196>}, {transform_indices = @transform_1, window_bounds = array<i64: 1, 256, 1>}, {transform_indices = @transform_2, window_bounds = array<i64: 1, 256, 1>}, {transform_indices = @transform_3, window_bounds = array<i64: 1, 256, 196>}]} {
    %c0 = arith.constant 0 : index
    %c0_0 = arith.constant 0 : index
    %c0_1 = arith.constant 0 : index
    %0 = vector.load %arg1[%c0, %c0_0, %c0_1] : memref<1x256x196xf32, #tpu.memory_space<vmem>>, vector<1x32x196xf32>
    %cst = arith.constant dense<0.000000e+00> : vector<32xf32>
    %1 = vector.multi_reduction <add>, %0, %cst [0, 2] : vector<1x32x196xf32> to vector<32xf32>
    %2 = vector.shape_cast %1 : vector<32xf32> to vector<1x32x1xf32>
    %3 = arith.mulf %0, %0 : vector<1x32x196xf32>
    %cst_2 = arith.constant dense<0.000000e+00> : vector<32xf32>
    %4 = vector.multi_reduction <add>, %3, %cst_2 [0, 2] : vector<1x32x196xf32> to vector<32xf32>
    %5 = vector.shape_cast %4 : vector<32xf32> to vector<1x32x1xf32>
    %cst_3 = arith.constant 0.00510204071 : f32
    %6 = vector.broadcast %cst_3 : f32 to vector<1x32x1xf32>
    %7 = arith.mulf %2, %6 : vector<1x32x1xf32>
    %cst_4 = arith.constant 0.00510204071 : f32
    %8 = vector.broadcast %cst_4 : f32 to vector<1x32x1xf32>
    %9 = arith.mulf %5, %8 : vector<1x32x1xf32>
    %10 = arith.mulf %7, %7 : vector<1x32x1xf32>
    %11 = arith.subf %9, %10 : vector<1x32x1xf32>
    %cst_5 = arith.constant 0.000000e+00 : f32
    %12 = vector.broadcast %cst_5 : f32 to vector<1x32x1xf32>
    %13 = arith.maximumf %11, %12 : vector<1x32x1xf32>
    %cst_6 = arith.constant 9.99999974E-6 : f32
    %14 = vector.broadcast %cst_6 : f32 to vector<1x32x1xf32>
    %15 = arith.addf %13, %14 : vector<1x32x1xf32>
    %16 = math.rsqrt %15 : vector<1x32x1xf32>
    %c0_7 = arith.constant 0 : index
    %c0_8 = arith.constant 0 : index
    %c0_9 = arith.constant 0 : index
    %17 = vector.load %arg2[%c0_7, %c0_8, %c0_9] : memref<1x256x1xf32, #tpu.memory_space<vmem>>, vector<1x32x1xf32>
    %18 = arith.mulf %17, %16 : vector<1x32x1xf32>
    %c0_10 = arith.constant 0 : index
    %c0_11 = arith.constant 0 : index
    %c0_12 = arith.constant 0 : index
    %19 = vector.load %arg3[%c0_10, %c0_11, %c0_12] : memref<1x256x1xf32, #tpu.memory_space<vmem>>, vector<1x32x1xf32>
    %20 = arith.mulf %7, %18 : vector<1x32x1xf32>
    %21 = arith.subf %19, %20 : vector<1x32x1xf32>
    %c0_13 = arith.constant 0 : index
    %c0_14 = arith.constant 0 : index
    %c0_15 = arith.constant 0 : index
    %22 = vector.load %arg1[%c0_13, %c0_14, %c0_15] : memref<1x256x196xf32, #tpu.memory_space<vmem>>, vector<1x32x196xf32>
    %23 = vector.broadcast %18 : vector<1x32x1xf32> to vector<1x32x196xf32>
    %24 = arith.mulf %22, %23 : vector<1x32x196xf32>
    %25 = vector.broadcast %21 : vector<1x32x1xf32> to vector<1x32x196xf32>
    %26 = arith.addf %24, %25 : vector<1x32x196xf32>
    %cst_16 = arith.constant 0.000000e+00 : f32
    %27 = vector.broadcast %cst_16 : f32 to vector<1x32x196xf32>
    %28 = arith.maximumf %26, %27 : vector<1x32x196xf32>
    %c0_17 = arith.constant 0 : index
    %c0_18 = arith.constant 0 : index
    %c0_19 = arith.constant 0 : index
    %29 = vector.load %arg4[%c0_17, %c0_18, %c0_19] : memref<1x256x196xf32, #tpu.memory_space<vmem>>, vector<1x32x196xf32>
    tpu.vector_store %arg4[%c0_17, %c0_18, %c0_19], %28 {strides = array<i32>} : memref<1x256x196xf32, #tpu.memory_space<vmem>>, vector<1x32x196xf32>,
    %c0_20 = arith.constant 0 : index
    %c32 = arith.constant 32 : index
    %c0_21 = arith.constant 0 : index
    %30 = vector.load %arg1[%c0_20, %c32, %c0_21] : memref<1x256x196xf32, #tpu.memory_space<vmem>>, vector<1x32x196xf32>
    %cst_22 = arith.constant dense<0.000000e+00> : vector<32xf32>
    %31 = vector.multi_reduction <add>, %30, %cst_22 [0, 2] : vector<1x32x196xf32> to vector<32xf32>
    %32 = vector.shape_cast %31 : vector<32xf32> to vector<1x32x1xf32>
    %33 = arith.mulf %30, %30 : vector<1x32x196xf32>
    %cst_23 = arith.constant dense<0.000000e+00> : vector<32xf32>
    %34 = vector.multi_reduction <add>, %33, %cst_23 [0, 2] : vector<1x32x196xf32> to vector<32xf32>
    %35 = vector.shape_cast %34 : vector<32xf32> to vector<1x32x1xf32>
    %cst_24 = arith.constant 0.00510204071 : f32
    %36 = vector.broadcast %cst_24 : f32 to vector<1x32x1xf32>
    %37 = arith.mulf %32, %36 : vector<1x32x1xf32>
    %cst_25 = arith.constant 0.00510204071 : f32
    %38 = vector.broadcast %cst_25 : f32 to vector<1x32x1xf32>
    %39 = arith.mulf %35, %38 : vector<1x32x1xf32>
    %40 = arith.mulf %37, %37 : vector<1x32x1xf32>
    %41 = arith.subf %39, %40 : vector<1x32x1xf32>
    %cst_26 = arith.constant 0.000000e+00 : f32
    %42 = vector.broadcast %cst_26 : f32 to vector<1x32x1xf32>
    %43 = arith.maximumf %41, %42 : vector<1x32x1xf32>
    %cst_27 = arith.constant 9.99999974E-6 : f32
    %44 = vector.broadcast %cst_27 : f32 to vector<1x32x1xf32>
    %45 = arith.addf %43, %44 : vector<1x32x1xf32>
    %46 = math.rsqrt %45 : vector<1x32x1xf32>
    %c0_28 = arith.constant 0 : index
    %c32_29 = arith.constant 32 : index
    %c0_30 = arith.constant 0 : index
    %47 = vector.load %arg2[%c0_28, %c32_29, %c0_30] : memref<1x256x1xf32, #tpu.memory_space<vmem>>, vector<1x32x1xf32>
    %48 = arith.mulf %47, %46 : vector<1x32x1xf32>
    %c0_31 = arith.constant 0 : index
    %c32_32 = arith.constant 32 : index
    %c0_33 = arith.constant 0 : index
    %49 = vector.load %arg3[%c0_31, %c32_32, %c0_33] : memref<1x256x1xf32, #tpu.memory_space<vmem>>, vector<1x32x1xf32>
    %50 = arith.mulf %37, %48 : vector<1x32x1xf32>
    %51 = arith.subf %49, %50 : vector<1x32x1xf32>
    %c0_34 = arith.constant 0 : index
    %c32_35 = arith.constant 32 : index
    %c0_36 = arith.constant 0 : index
    %52 = vector.load %arg1[%c0_34, %c32_35, %c0_36] : memref<1x256x196xf32, #tpu.memory_space<vmem>>, vector<1x32x196xf32>
    %53 = vector.broadcast %48 : vector<1x32x1xf32> to vector<1x32x196xf32>
    %54 = arith.mulf %52, %53 : vector<1x32x196xf32>
    %55 = vector.broadcast %51 : vector<1x32x1xf32> to vector<1x32x196xf32>
    %56 = arith.addf %54, %55 : vector<1x32x196xf32>
    %cst_37 = arith.constant 0.000000e+00 : f32
    %57 = vector.broadcast %cst_37 : f32 to vector<1x32x196xf32>
    %58 = arith.maximumf %56, %57 : vector<1x32x196xf32>
    %c0_38 = arith.constant 0 : index
    %c32_39 = arith.constant 32 : index
    %c0_40 = arith.constant 0 : index
    %59 = vector.load %arg4[%c0_38, %c32_39, %c0_40] : memref<1x256x196xf32, #tpu.memory_space<vmem>>, vector<1x32x196xf32>
    tpu.vector_store %arg4[%c0_38, %c32_39, %c0_40], %58 {strides = array<i32>} : memref<1x256x196xf32, #tpu.memory_space<vmem>>, vector<1x32x196xf32>,
    %c0_41 = arith.constant 0 : index
    %c64 = arith.constant 64 : index
    %c0_42 = arith.constant 0 : index
    %60 = vector.load %arg1[%c0_41, %c64, %c0_42] : memref<1x256x196xf32, #tpu.memory_space<vmem>>, vector<1x32x196xf32>
    %cst_43 = arith.constant dense<0.000000e+00> : vector<32xf32>
    %61 = vector.multi_reduction <add>, %60, %cst_43 [0, 2] : vector<1x32x196xf32> to vector<32xf32>
    %62 = vector.shape_cast %61 : vector<32xf32> to vector<1x32x1xf32>
    %63 = arith.mulf %60, %60 : vector<1x32x196xf32>
    %cst_44 = arith.constant dense<0.000000e+00> : vector<32xf32>
    %64 = vector.multi_reduction <add>, %63, %cst_44 [0, 2] : vector<1x32x196xf32> to vector<32xf32>
    %65 = vector.shape_cast %64 : vector<32xf32> to vector<1x32x1xf32>
    %cst_45 = arith.constant 0.00510204071 : f32
    %66 = vector.broadcast %cst_45 : f32 to vector<1x32x1xf32>
    %67 = arith.mulf %62, %66 : vector<1x32x1xf32>
    %cst_46 = arith.constant 0.00510204071 : f32
    %68 = vector.broadcast %cst_46 : f32 to vector<1x32x1xf32>
    %69 = arith.mulf %65, %68 : vector<1x32x1xf32>
    %70 = arith.mulf %67, %67 : vector<1x32x1xf32>
    %71 = arith.subf %69, %70 : vector<1x32x1xf32>
    %cst_47 = arith.constant 0.000000e+00 : f32
    %72 = vector.broadcast %cst_47 : f32 to vector<1x32x1xf32>
    %73 = arith.maximumf %71, %72 : vector<1x32x1xf32>
    %cst_48 = arith.constant 9.99999974E-6 : f32
    %74 = vector.broadcast %cst_48 : f32 to vector<1x32x1xf32>
    %75 = arith.addf %73, %74 : vector<1x32x1xf32>
    %76 = math.rsqrt %75 : vector<1x32x1xf32>
    %c0_49 = arith.constant 0 : index
    %c64_50 = arith.constant 64 : index
    %c0_51 = arith.constant 0 : index
    %77 = vector.load %arg2[%c0_49, %c64_50, %c0_51] : memref<1x256x1xf32, #tpu.memory_space<vmem>>, vector<1x32x1xf32>
    %78 = arith.mulf %77, %76 : vector<1x32x1xf32>
    %c0_52 = arith.constant 0 : index
    %c64_53 = arith.constant 64 : index
    %c0_54 = arith.constant 0 : index
    %79 = vector.load %arg3[%c0_52, %c64_53, %c0_54] : memref<1x256x1xf32, #tpu.memory_space<vmem>>, vector<1x32x1xf32>
    %80 = arith.mulf %67, %78 : vector<1x32x1xf32>
    %81 = arith.subf %79, %80 : vector<1x32x1xf32>
    %c0_55 = arith.constant 0 : index
    %c64_56 = arith.constant 64 : index
    %c0_57 = arith.constant 0 : index
    %82 = vector.load %arg1[%c0_55, %c64_56, %c0_57] : memref<1x256x196xf32, #tpu.memory_space<vmem>>, vector<1x32x196xf32>
    %83 = vector.broadcast %78 : vector<1x32x1xf32> to vector<1x32x196xf32>
    %84 = arith.mulf %82, %83 : vector<1x32x196xf32>
    %85 = vector.broadcast %81 : vector<1x32x1xf32> to vector<1x32x196xf32>
    %86 = arith.addf %84, %85 : vector<1x32x196xf32>
    %cst_58 = arith.constant 0.000000e+00 : f32
    %87 = vector.broadcast %cst_58 : f32 to vector<1x32x196xf32>
    %88 = arith.maximumf %86, %87 : vector<1x32x196xf32>
    %c0_59 = arith.constant 0 : index
    %c64_60 = arith.constant 64 : index
    %c0_61 = arith.constant 0 : index
    %89 = vector.load %arg4[%c0_59, %c64_60, %c0_61] : memref<1x256x196xf32, #tpu.memory_space<vmem>>, vector<1x32x196xf32>
    tpu.vector_store %arg4[%c0_59, %c64_60, %c0_61], %88 {strides = array<i32>} : memref<1x256x196xf32, #tpu.memory_space<vmem>>, vector<1x32x196xf32>,
    %c0_62 = arith.constant 0 : index
    %c96 = arith.constant 96 : index
    %c0_63 = arith.constant 0 : index
    %90 = vector.load %arg1[%c0_62, %c96, %c0_63] : memref<1x256x196xf32, #tpu.memory_space<vmem>>, vector<1x32x196xf32>
    %cst_64 = arith.constant dense<0.000000e+00> : vector<32xf32>
    %91 = vector.multi_reduction <add>, %90, %cst_64 [0, 2] : vector<1x32x196xf32> to vector<32xf32>
    %92 = vector.shape_cast %91 : vector<32xf32> to vector<1x32x1xf32>
    %93 = arith.mulf %90, %90 : vector<1x32x196xf32>
    %cst_65 = arith.constant dense<0.000000e+00> : vector<32xf32>
    %94 = vector.multi_reduction <add>, %93, %cst_65 [0, 2] : vector<1x32x196xf32> to vector<32xf32>
    %95 = vector.shape_cast %94 : vector<32xf32> to vector<1x32x1xf32>
    %cst_66 = arith.constant 0.00510204071 : f32
    %96 = vector.broadcast %cst_66 : f32 to vector<1x32x1xf32>
    %97 = arith.mulf %92, %96 : vector<1x32x1xf32>
    %cst_67 = arith.constant 0.00510204071 : f32
    %98 = vector.broadcast %cst_67 : f32 to vector<1x32x1xf32>
    %99 = arith.mulf %95, %98 : vector<1x32x1xf32>
    %100 = arith.mulf %97, %97 : vector<1x32x1xf32>
    %101 = arith.subf %99, %100 : vector<1x32x1xf32>
    %cst_68 = arith.constant 0.000000e+00 : f32
    %102 = vector.broadcast %cst_68 : f32 to vector<1x32x1xf32>
    %103 = arith.maximumf %101, %102 : vector<1x32x1xf32>
    %cst_69 = arith.constant 9.99999974E-6 : f32
    %104 = vector.broadcast %cst_69 : f32 to vector<1x32x1xf32>
    %105 = arith.addf %103, %104 : vector<1x32x1xf32>
    %106 = math.rsqrt %105 : vector<1x32x1xf32>
    %c0_70 = arith.constant 0 : index
    %c96_71 = arith.constant 96 : index
    %c0_72 = arith.constant 0 : index
    %107 = vector.load %arg2[%c0_70, %c96_71, %c0_72] : memref<1x256x1xf32, #tpu.memory_space<vmem>>, vector<1x32x1xf32>
    %108 = arith.mulf %107, %106 : vector<1x32x1xf32>
    %c0_73 = arith.constant 0 : index
    %c96_74 = arith.constant 96 : index
    %c0_75 = arith.constant 0 : index
    %109 = vector.load %arg3[%c0_73, %c96_74, %c0_75] : memref<1x256x1xf32, #tpu.memory_space<vmem>>, vector<1x32x1xf32>
    %110 = arith.mulf %97, %108 : vector<1x32x1xf32>
    %111 = arith.subf %109, %110 : vector<1x32x1xf32>
    %c0_76 = arith.constant 0 : index
    %c96_77 = arith.constant 96 : index
    %c0_78 = arith.constant 0 : index
    %112 = vector.load %arg1[%c0_76, %c96_77, %c0_78] : memref<1x256x196xf32, #tpu.memory_space<vmem>>, vector<1x32x196xf32>
    %113 = vector.broadcast %108 : vector<1x32x1xf32> to vector<1x32x196xf32>
    %114 = arith.mulf %112, %113 : vector<1x32x196xf32>
    %115 = vector.broadcast %111 : vector<1x32x1xf32> to vector<1x32x196xf32>
    %116 = arith.addf %114, %115 : vector<1x32x196xf32>
    %cst_79 = arith.constant 0.000000e+00 : f32
    %117 = vector.broadcast %cst_79 : f32 to vector<1x32x196xf32>
    %118 = arith.maximumf %116, %117 : vector<1x32x196xf32>
    %c0_80 = arith.constant 0 : index
    %c96_81 = arith.constant 96 : index
    %c0_82 = arith.constant 0 : index
    %119 = vector.load %arg4[%c0_80, %c96_81, %c0_82] : memref<1x256x196xf32, #tpu.memory_space<vmem>>, vector<1x32x196xf32>
    tpu.vector_store %arg4[%c0_80, %c96_81, %c0_82], %118 {strides = array<i32>} : memref<1x256x196xf32, #tpu.memory_space<vmem>>, vector<1x32x196xf32>,
    %c0_83 = arith.constant 0 : index
    %c128 = arith.constant 128 : index
    %c0_84 = arith.constant 0 : index
    %120 = vector.load %arg1[%c0_83, %c128, %c0_84] : memref<1x256x196xf32, #tpu.memory_space<vmem>>, vector<1x32x196xf32>
    %cst_85 = arith.constant dense<0.000000e+00> : vector<32xf32>
    %121 = vector.multi_reduction <add>, %120, %cst_85 [0, 2] : vector<1x32x196xf32> to vector<32xf32>
    %122 = vector.shape_cast %121 : vector<32xf32> to vector<1x32x1xf32>
    %123 = arith.mulf %120, %120 : vector<1x32x196xf32>
    %cst_86 = arith.constant dense<0.000000e+00> : vector<32xf32>
    %124 = vector.multi_reduction <add>, %123, %cst_86 [0, 2] : vector<1x32x196xf32> to vector<32xf32>
    %125 = vector.shape_cast %124 : vector<32xf32> to vector<1x32x1xf32>
    %cst_87 = arith.constant 0.00510204071 : f32
    %126 = vector.broadcast %cst_87 : f32 to vector<1x32x1xf32>
    %127 = arith.mulf %122, %126 : vector<1x32x1xf32>
    %cst_88 = arith.constant 0.00510204071 : f32
    %128 = vector.broadcast %cst_88 : f32 to vector<1x32x1xf32>
    %129 = arith.mulf %125, %128 : vector<1x32x1xf32>
    %130 = arith.mulf %127, %127 : vector<1x32x1xf32>
    %131 = arith.subf %129, %130 : vector<1x32x1xf32>
    %cst_89 = arith.constant 0.000000e+00 : f32
    %132 = vector.broadcast %cst_89 : f32 to vector<1x32x1xf32>
    %133 = arith.maximumf %131, %132 : vector<1x32x1xf32>
    %cst_90 = arith.constant 9.99999974E-6 : f32
    %134 = vector.broadcast %cst_90 : f32 to vector<1x32x1xf32>
    %135 = arith.addf %133, %134 : vector<1x32x1xf32>
    %136 = math.rsqrt %135 : vector<1x32x1xf32>
    %c0_91 = arith.constant 0 : index
    %c128_92 = arith.constant 128 : index
    %c0_93 = arith.constant 0 : index
    %137 = vector.load %arg2[%c0_91, %c128_92, %c0_93] : memref<1x256x1xf32, #tpu.memory_space<vmem>>, vector<1x32x1xf32>
    %138 = arith.mulf %137, %136 : vector<1x32x1xf32>
    %c0_94 = arith.constant 0 : index
    %c128_95 = arith.constant 128 : index
    %c0_96 = arith.constant 0 : index
    %139 = vector.load %arg3[%c0_94, %c128_95, %c0_96] : memref<1x256x1xf32, #tpu.memory_space<vmem>>, vector<1x32x1xf32>
    %140 = arith.mulf %127, %138 : vector<1x32x1xf32>
    %141 = arith.subf %139, %140 : vector<1x32x1xf32>
    %c0_97 = arith.constant 0 : index
    %c128_98 = arith.constant 128 : index
    %c0_99 = arith.constant 0 : index
    %142 = vector.load %arg1[%c0_97, %c128_98, %c0_99] : memref<1x256x196xf32, #tpu.memory_space<vmem>>, vector<1x32x196xf32>
    %143 = vector.broadcast %138 : vector<1x32x1xf32> to vector<1x32x196xf32>
    %144 = arith.mulf %142, %143 : vector<1x32x196xf32>
    %145 = vector.broadcast %141 : vector<1x32x1xf32> to vector<1x32x196xf32>
    %146 = arith.addf %144, %145 : vector<1x32x196xf32>
    %cst_100 = arith.constant 0.000000e+00 : f32
    %147 = vector.broadcast %cst_100 : f32 to vector<1x32x196xf32>
    %148 = arith.maximumf %146, %147 : vector<1x32x196xf32>
    %c0_101 = arith.constant 0 : index
    %c128_102 = arith.constant 128 : index
    %c0_103 = arith.constant 0 : index
    %149 = vector.load %arg4[%c0_101, %c128_102, %c0_103] : memref<1x256x196xf32, #tpu.memory_space<vmem>>, vector<1x32x196xf32>
    tpu.vector_store %arg4[%c0_101, %c128_102, %c0_103], %148 {strides = array<i32>} : memref<1x256x196xf32, #tpu.memory_space<vmem>>, vector<1x32x196xf32>,
    %c0_104 = arith.constant 0 : index
    %c160 = arith.constant 160 : index
    %c0_105 = arith.constant 0 : index
    %150 = vector.load %arg1[%c0_104, %c160, %c0_105] : memref<1x256x196xf32, #tpu.memory_space<vmem>>, vector<1x32x196xf32>
    %cst_106 = arith.constant dense<0.000000e+00> : vector<32xf32>
    %151 = vector.multi_reduction <add>, %150, %cst_106 [0, 2] : vector<1x32x196xf32> to vector<32xf32>
    %152 = vector.shape_cast %151 : vector<32xf32> to vector<1x32x1xf32>
    %153 = arith.mulf %150, %150 : vector<1x32x196xf32>
    %cst_107 = arith.constant dense<0.000000e+00> : vector<32xf32>
    %154 = vector.multi_reduction <add>, %153, %cst_107 [0, 2] : vector<1x32x196xf32> to vector<32xf32>
    %155 = vector.shape_cast %154 : vector<32xf32> to vector<1x32x1xf32>
    %cst_108 = arith.constant 0.00510204071 : f32
    %156 = vector.broadcast %cst_108 : f32 to vector<1x32x1xf32>
    %157 = arith.mulf %152, %156 : vector<1x32x1xf32>
    %cst_109 = arith.constant 0.00510204071 : f32
    %158 = vector.broadcast %cst_109 : f32 to vector<1x32x1xf32>
    %159 = arith.mulf %155, %158 : vector<1x32x1xf32>
    %160 = arith.mulf %157, %157 : vector<1x32x1xf32>
    %161 = arith.subf %159, %160 : vector<1x32x1xf32>
    %cst_110 = arith.constant 0.000000e+00 : f32
    %162 = vector.broadcast %cst_110 : f32 to vector<1x32x1xf32>
    %163 = arith.maximumf %161, %162 : vector<1x32x1xf32>
    %cst_111 = arith.constant 9.99999974E-6 : f32
    %164 = vector.broadcast %cst_111 : f32 to vector<1x32x1xf32>
    %165 = arith.addf %163, %164 : vector<1x32x1xf32>
    %166 = math.rsqrt %165 : vector<1x32x1xf32>
    %c0_112 = arith.constant 0 : index
    %c160_113 = arith.constant 160 : index
    %c0_114 = arith.constant 0 : index
    %167 = vector.load %arg2[%c0_112, %c160_113, %c0_114] : memref<1x256x1xf32, #tpu.memory_space<vmem>>, vector<1x32x1xf32>
    %168 = arith.mulf %167, %166 : vector<1x32x1xf32>
    %c0_115 = arith.constant 0 : index
    %c160_116 = arith.constant 160 : index
    %c0_117 = arith.constant 0 : index
    %169 = vector.load %arg3[%c0_115, %c160_116, %c0_117] : memref<1x256x1xf32, #tpu.memory_space<vmem>>, vector<1x32x1xf32>
    %170 = arith.mulf %157, %168 : vector<1x32x1xf32>
    %171 = arith.subf %169, %170 : vector<1x32x1xf32>
    %c0_118 = arith.constant 0 : index
    %c160_119 = arith.constant 160 : index
    %c0_120 = arith.constant 0 : index
    %172 = vector.load %arg1[%c0_118, %c160_119, %c0_120] : memref<1x256x196xf32, #tpu.memory_space<vmem>>, vector<1x32x196xf32>
    %173 = vector.broadcast %168 : vector<1x32x1xf32> to vector<1x32x196xf32>
    %174 = arith.mulf %172, %173 : vector<1x32x196xf32>
    %175 = vector.broadcast %171 : vector<1x32x1xf32> to vector<1x32x196xf32>
    %176 = arith.addf %174, %175 : vector<1x32x196xf32>
    %cst_121 = arith.constant 0.000000e+00 : f32
    %177 = vector.broadcast %cst_121 : f32 to vector<1x32x196xf32>
    %178 = arith.maximumf %176, %177 : vector<1x32x196xf32>
    %c0_122 = arith.constant 0 : index
    %c160_123 = arith.constant 160 : index
    %c0_124 = arith.constant 0 : index
    %179 = vector.load %arg4[%c0_122, %c160_123, %c0_124] : memref<1x256x196xf32, #tpu.memory_space<vmem>>, vector<1x32x196xf32>
    tpu.vector_store %arg4[%c0_122, %c160_123, %c0_124], %178 {strides = array<i32>} : memref<1x256x196xf32, #tpu.memory_space<vmem>>, vector<1x32x196xf32>,
    %c0_125 = arith.constant 0 : index
    %c192 = arith.constant 192 : index
    %c0_126 = arith.constant 0 : index
    %180 = vector.load %arg1[%c0_125, %c192, %c0_126] : memref<1x256x196xf32, #tpu.memory_space<vmem>>, vector<1x32x196xf32>
    %cst_127 = arith.constant dense<0.000000e+00> : vector<32xf32>
    %181 = vector.multi_reduction <add>, %180, %cst_127 [0, 2] : vector<1x32x196xf32> to vector<32xf32>
    %182 = vector.shape_cast %181 : vector<32xf32> to vector<1x32x1xf32>
    %183 = arith.mulf %180, %180 : vector<1x32x196xf32>
    %cst_128 = arith.constant dense<0.000000e+00> : vector<32xf32>
    %184 = vector.multi_reduction <add>, %183, %cst_128 [0, 2] : vector<1x32x196xf32> to vector<32xf32>
    %185 = vector.shape_cast %184 : vector<32xf32> to vector<1x32x1xf32>
    %cst_129 = arith.constant 0.00510204071 : f32
    %186 = vector.broadcast %cst_129 : f32 to vector<1x32x1xf32>
    %187 = arith.mulf %182, %186 : vector<1x32x1xf32>
    %cst_130 = arith.constant 0.00510204071 : f32
    %188 = vector.broadcast %cst_130 : f32 to vector<1x32x1xf32>
    %189 = arith.mulf %185, %188 : vector<1x32x1xf32>
    %190 = arith.mulf %187, %187 : vector<1x32x1xf32>
    %191 = arith.subf %189, %190 : vector<1x32x1xf32>
    %cst_131 = arith.constant 0.000000e+00 : f32
    %192 = vector.broadcast %cst_131 : f32 to vector<1x32x1xf32>
    %193 = arith.maximumf %191, %192 : vector<1x32x1xf32>
    %cst_132 = arith.constant 9.99999974E-6 : f32
    %194 = vector.broadcast %cst_132 : f32 to vector<1x32x1xf32>
    %195 = arith.addf %193, %194 : vector<1x32x1xf32>
    %196 = math.rsqrt %195 : vector<1x32x1xf32>
    %c0_133 = arith.constant 0 : index
    %c192_134 = arith.constant 192 : index
    %c0_135 = arith.constant 0 : index
    %197 = vector.load %arg2[%c0_133, %c192_134, %c0_135] : memref<1x256x1xf32, #tpu.memory_space<vmem>>, vector<1x32x1xf32>
    %198 = arith.mulf %197, %196 : vector<1x32x1xf32>
    %c0_136 = arith.constant 0 : index
    %c192_137 = arith.constant 192 : index
    %c0_138 = arith.constant 0 : index
    %199 = vector.load %arg3[%c0_136, %c192_137, %c0_138] : memref<1x256x1xf32, #tpu.memory_space<vmem>>, vector<1x32x1xf32>
    %200 = arith.mulf %187, %198 : vector<1x32x1xf32>
    %201 = arith.subf %199, %200 : vector<1x32x1xf32>
    %c0_139 = arith.constant 0 : index
    %c192_140 = arith.constant 192 : index
    %c0_141 = arith.constant 0 : index
    %202 = vector.load %arg1[%c0_139, %c192_140, %c0_141] : memref<1x256x196xf32, #tpu.memory_space<vmem>>, vector<1x32x196xf32>
    %203 = vector.broadcast %198 : vector<1x32x1xf32> to vector<1x32x196xf32>
    %204 = arith.mulf %202, %203 : vector<1x32x196xf32>
    %205 = vector.broadcast %201 : vector<1x32x1xf32> to vector<1x32x196xf32>
    %206 = arith.addf %204, %205 : vector<1x32x196xf32>
    %cst_142 = arith.constant 0.000000e+00 : f32
    %207 = vector.broadcast %cst_142 : f32 to vector<1x32x196xf32>
    %208 = arith.maximumf %206, %207 : vector<1x32x196xf32>
    %c0_143 = arith.constant 0 : index
    %c192_144 = arith.constant 192 : index
    %c0_145 = arith.constant 0 : index
    %209 = vector.load %arg4[%c0_143, %c192_144, %c0_145] : memref<1x256x196xf32, #tpu.memory_space<vmem>>, vector<1x32x196xf32>
    tpu.vector_store %arg4[%c0_143, %c192_144, %c0_145], %208 {strides = array<i32>} : memref<1x256x196xf32, #tpu.memory_space<vmem>>, vector<1x32x196xf32>,
    %c0_146 = arith.constant 0 : index
    %c224 = arith.constant 224 : index
    %c0_147 = arith.constant 0 : index
    %210 = vector.load %arg1[%c0_146, %c224, %c0_147] : memref<1x256x196xf32, #tpu.memory_space<vmem>>, vector<1x32x196xf32>
    %cst_148 = arith.constant dense<0.000000e+00> : vector<32xf32>
    %211 = vector.multi_reduction <add>, %210, %cst_148 [0, 2] : vector<1x32x196xf32> to vector<32xf32>
    %212 = vector.shape_cast %211 : vector<32xf32> to vector<1x32x1xf32>
    %213 = arith.mulf %210, %210 : vector<1x32x196xf32>
    %cst_149 = arith.constant dense<0.000000e+00> : vector<32xf32>
    %214 = vector.multi_reduction <add>, %213, %cst_149 [0, 2] : vector<1x32x196xf32> to vector<32xf32>
    %215 = vector.shape_cast %214 : vector<32xf32> to vector<1x32x1xf32>
    %cst_150 = arith.constant 0.00510204071 : f32
    %216 = vector.broadcast %cst_150 : f32 to vector<1x32x1xf32>
    %217 = arith.mulf %212, %216 : vector<1x32x1xf32>
    %cst_151 = arith.constant 0.00510204071 : f32
    %218 = vector.broadcast %cst_151 : f32 to vector<1x32x1xf32>
    %219 = arith.mulf %215, %218 : vector<1x32x1xf32>
    %220 = arith.mulf %217, %217 : vector<1x32x1xf32>
    %221 = arith.subf %219, %220 : vector<1x32x1xf32>
    %cst_152 = arith.constant 0.000000e+00 : f32
    %222 = vector.broadcast %cst_152 : f32 to vector<1x32x1xf32>
    %223 = arith.maximumf %221, %222 : vector<1x32x1xf32>
    %cst_153 = arith.constant 9.99999974E-6 : f32
    %224 = vector.broadcast %cst_153 : f32 to vector<1x32x1xf32>
    %225 = arith.addf %223, %224 : vector<1x32x1xf32>
    %226 = math.rsqrt %225 : vector<1x32x1xf32>
    %c0_154 = arith.constant 0 : index
    %c224_155 = arith.constant 224 : index
    %c0_156 = arith.constant 0 : index
    %227 = vector.load %arg2[%c0_154, %c224_155, %c0_156] : memref<1x256x1xf32, #tpu.memory_space<vmem>>, vector<1x32x1xf32>
    %228 = arith.mulf %227, %226 : vector<1x32x1xf32>
    %c0_157 = arith.constant 0 : index
    %c224_158 = arith.constant 224 : index
    %c0_159 = arith.constant 0 : index
    %229 = vector.load %arg3[%c0_157, %c224_158, %c0_159] : memref<1x256x1xf32, #tpu.memory_space<vmem>>, vector<1x32x1xf32>
    %230 = arith.mulf %217, %228 : vector<1x32x1xf32>
    %231 = arith.subf %229, %230 : vector<1x32x1xf32>
    %c0_160 = arith.constant 0 : index
    %c224_161 = arith.constant 224 : index
    %c0_162 = arith.constant 0 : index
    %232 = vector.load %arg1[%c0_160, %c224_161, %c0_162] : memref<1x256x196xf32, #tpu.memory_space<vmem>>, vector<1x32x196xf32>
    %233 = vector.broadcast %228 : vector<1x32x1xf32> to vector<1x32x196xf32>
    %234 = arith.mulf %232, %233 : vector<1x32x196xf32>
    %235 = vector.broadcast %231 : vector<1x32x1xf32> to vector<1x32x196xf32>
    %236 = arith.addf %234, %235 : vector<1x32x196xf32>
    %cst_163 = arith.constant 0.000000e+00 : f32
    %237 = vector.broadcast %cst_163 : f32 to vector<1x32x196xf32>
    %238 = arith.maximumf %236, %237 : vector<1x32x196xf32>
    %c0_164 = arith.constant 0 : index
    %c224_165 = arith.constant 224 : index
    %c0_166 = arith.constant 0 : index
    %239 = vector.load %arg4[%c0_164, %c224_165, %c0_166] : memref<1x256x196xf32, #tpu.memory_space<vmem>>, vector<1x32x196xf32>
    tpu.vector_store %arg4[%c0_164, %c224_165, %c0_166], %238 {strides = array<i32>} : memref<1x256x196xf32, #tpu.memory_space<vmem>>, vector<1x32x196xf32>,
    return
  }
  func.func @transform_0(%arg0: i32) -> (i32, i32, i32) {
    %c0_i32 = arith.constant 0 : i32
    %c0_i32_0 = arith.constant 0 : i32
    %c0_i32_1 = arith.constant 0 : i32
    return %c0_i32, %arg0, %c0_i32_0 : i32, i32, i32
  }
  func.func @transform_1(%arg0: i32) -> (i32, i32, i32) {
    %c0_i32 = arith.constant 0 : i32
    %c0_i32_0 = arith.constant 0 : i32
    %c0_i32_1 = arith.constant 0 : i32
    return %c0_i32, %arg0, %c0_i32_0 : i32, i32, i32
  }
  func.func @transform_2(%arg0: i32) -> (i32, i32, i32) {
    %c0_i32 = arith.constant 0 : i32
    %c0_i32_0 = arith.constant 0 : i32
    %c0_i32_1 = arith.constant 0 : i32
    return %c0_i32, %arg0, %c0_i32_0 : i32, i32, i32
  }
  func.func @transform_3(%arg0: i32) -> (i32, i32, i32) {
    %c0_i32 = arith.constant 0 : i32
    %c0_i32_0 = arith.constant 0 : i32
    %c0_i32_1 = arith.constant 0 : i32
    return %c0_i32, %arg0, %c0_i32_0 : i32, i32, i32
  }
}

</mosaic_0001>

<bundles_post_ra>
// kernel: tpu_custom_call.1
= control target key start
LH: loop header
LB: loop body
LE: loop exit
PB: predicated region body
PF: predicated region fallthrough
CT: control target
= control target key end

     0   :  { %vm22_vm0 = vcmask 556032   ;;  %s2547_s0 = inlined_call_operand.vmem [shape: f32[1,256,196], index: 0, kind: input, shape index: {}]   ;;  %s2548_s1 = inlined_call_operand.vmem [shape: f32[1,256,1], index: 1, kind: input, shape index: {}]   ;;  %s2549_s2 = inlined_call_operand.vmem [shape: f32[1,256,1], index: 2, kind: input, shape index: {}]   ;;  %s2550_s3 = inlined_call_operand.vmem [shape: f32[1,256,196], index: 3, kind: output, shape index: {}]  }
   0x1   :  { %v18_v0 = vld [vmem:[%s2547_s0 + $0x20] sm:$0xff]  ;;  %v19_v1 = vld [vmem:[%s2547_s0 + $0x28] sm:$0xff]  ;;  %v20_v5 = vld [vmem:[%s2547_s0 + $0x30] sm:$0xff] }
   0x2   :  { %v14_v2 = vld [vmem:[%s2547_s0] sm:$0xff]  ;;  %v31_v3 = vsel %vm22_vm0, %v19_v1, 0.0  ;;  %v15_v4 = vld [vmem:[%s2547_s0 + $0x8] sm:$0xff]  ;;  %v21_v6 = vld [vmem:[%s2547_s0 + $0x38] sm:$0xff]  ;;  %v44_v23 = vmul.f32 %v19_v1, %v19_v1  ;;  %v45_v25 = vmul.f32 %v20_v5, %v20_v5  ;;  %v43_v28 = vmul.f32 %v18_v0, %v18_v0 }
   0x3   :  { %v32_v7 = vadd.f32 %v31_v3, %v18_v0  ;;  %v23_v8 = vsel %vm22_vm0, %v15_v4, 0.0  ;;  %v35_v9 = vsel %vm22_vm0, %v21_v6, 0.0  ;;  %v16_v10 = vld [vmem:[%s2547_s0 + $0x10] sm:$0xff]  ;;  %v17_v11 = vld [vmem:[%s2547_s0 + $0x18] sm:$0xff]  ;;  %v40_v12 = vmul.f32 %v15_v4, %v15_v4  ;;  %v184_v30 = vld [vmem:[%s2547_s0 + $0x48] sm:$0xff] }
   0x4   :  { %v24_v13 = vadd.f32 %v23_v8, %v14_v2  ;;  %v27_v14 = vsel %vm22_vm0, %v17_v11, 0.0  ;;  %v36_v15 = vadd.f32 %v35_v9, %v20_v5  ;;  %v41_v16 = vmul.f32 %v16_v10, %v16_v10  ;;  %v186_v31 = vld [vmem:[%s2547_s0 + $0x58] sm:$0xff]  ;;  %v183_v34 = vld [vmem:[%s2547_s0 + $0x40] sm:$0xff]  ;;  %v185_v36 = vld [vmem:[%s2547_s0 + $0x50] sm:$0xff] }
   0x5   :  { %33 = vadd.xlane.f32.xlu1 %v32_v7  ;;  %v42_v17 = vmul.f32 %v17_v11, %v17_v11  ;;  %v28_v18 = vadd.f32 %v27_v14, %v16_v10  ;;  %v39_v19 = vmul.f32 %v14_v2, %v14_v2  ;;  %v46_v20 = vmul.f32 %v21_v6, %v21_v6  ;;  %v190_v38 = vld [vmem:[%s2547_s0 + $0x78] sm:$0xff]  ;;  %v188_v39 = vld [vmem:[%s2547_s0 + $0x68] sm:$0xff]  ;;  %v189_v42 = vld [vmem:[%s2547_s0 + $0x70] sm:$0xff] }
   0x6   :  { %25 = vadd.xlane.f32.xlu0 %v24_v13  ;;  %v47_v22 = vsel %vm22_vm0, %v40_v12, 0.0  ;;  %v55_v29 = vsel %vm22_vm0, %v44_v23, 0.0  ;;  %v191_v35 = vsel %vm22_vm0, %v184_v30, 0.0  ;;  %v195_v37 = vsel %vm22_vm0, %v186_v31, 0.0  ;;  %v187_v45 = vld [vmem:[%s2547_s0 + $0x60] sm:$0xff]  ;;  %v352_v62 = vld [vmem:[%s2547_s0 + $0x88] sm:$0xff] }
   0x7   :  { %v51_v21 = vsel %vm22_vm0, %v42_v17, 0.0  ;;  %v48_v26 = vadd.f32 %v47_v22, %v39_v19  ;;  %v59_v27 = vsel %vm22_vm0, %v46_v20, 0.0  ;;  %v56_v33 = vadd.f32 %v55_v29, %v43_v28  ;;  %v354_v63 = vld [vmem:[%s2547_s0 + $0x98] sm:$0xff]  ;;  %v351_v2 = vld [vmem:[%s2547_s0 + $0x80] sm:$0xff]  ;;  %v353_v4 = vld [vmem:[%s2547_s0 + $0x90] sm:$0xff] }
   0x8   :  { %v52_v24 = vadd.f32 %v51_v21, %v41_v16  ;;  %v60_v32 = vadd.f32 %v59_v27, %v45_v25  ;;  %v192_v40 = vadd.f32 %v191_v35, %v183_v34  ;;  %v196_v41 = vadd.f32 %v195_v37, %v185_v36  ;;  %v358_v6 = vld [vmem:[%s2547_s0 + $0xb8] sm:$0xff]  ;;  %v356_v7 = vld [vmem:[%s2547_s0 + $0xa8] sm:$0xff]  ;;  %v357_v10 = vld [vmem:[%s2547_s0 + $0xb0] sm:$0xff] }
   0x9   :  { %37 = vadd.xlane.f32.xlu1 %v36_v15  ;;  %v203_v43 = vsel %vm22_vm0, %v190_v38, 0.0  ;;  %v210_v44 = vmul.f32 %v186_v31, %v186_v31  ;;  %v199_v46 = vsel %vm22_vm0, %v188_v39, 0.0  ;;  %v208_v47 = vmul.f32 %v184_v30, %v184_v30  ;;  %v355_v13 = vld [vmem:[%s2547_s0 + $0xa0] sm:$0xff]  ;;  %v520_v30 = vld [vmem:[%s2547_s0 + $0xc8] sm:$0xff]  ;;  %v522_v31 = vld [vmem:[%s2547_s0 + $0xd8] sm:$0xff] }
   0xa   :  { %29 = vadd.xlane.f32.xlu0 %v28_v18  ;;  %v204_v48 = vadd.f32 %v203_v43, %v189_v42  ;;  %v209_v49 = vmul.f32 %v185_v36, %v185_v36  ;;  %v200_v50 = vadd.f32 %v199_v46, %v187_v45  ;;  %v207_v52 = vmul.f32 %v183_v34, %v183_v34  ;;  %v519_v34 = vld [vmem:[%s2547_s0 + $0xc0] sm:$0xff]  ;;  %v521_v36 = vld [vmem:[%s2547_s0 + $0xd0] sm:$0xff] }
   0xb   :  { %v219_v51 = vsel %vm22_vm0, %v210_v44, 0.0  ;;  %v214_v53 = vmul.f32 %v190_v38, %v190_v38  ;;  %v215_v54 = vsel %vm22_vm0, %v208_v47, 0.0  ;;  %v212_v55 = vmul.f32 %v188_v39, %v188_v39  ;;  %v526_v38 = vld [vmem:[%s2547_s0 + $0xf8] sm:$0xff]  ;;  %v524_v39 = vld [vmem:[%s2547_s0 + $0xe8] sm:$0xff]  ;;  %v525_v43 = vld [vmem:[%s2547_s0 + $0xf0] sm:$0xff] }
   0xc   :  { %v220_v56 = vadd.f32 %v219_v51, %v209_v49  ;;  %v213_v57 = vmul.f32 %v189_v42, %v189_v42  ;;  %v216_v58 = vadd.f32 %v215_v54, %v207_v52  ;;  %v211_v60 = vmul.f32 %v187_v45, %v187_v45  ;;  %v523_v46 = vld [vmem:[%s2547_s0 + $0xe0] sm:$0xff] }
   0xd   :  { %53 = vadd.xlane.f32.xlu1 %v52_v24  ;;  %v227_v59 = vsel %vm22_vm0, %v214_v53, 0.0  ;;  %v223_v61 = vsel %vm22_vm0, %v212_v55, 0.0  ;;  %v359_v3 = vsel %vm22_vm0, %v352_v62, 0.0  ;;  %v363_v5 = vsel %vm22_vm0, %v354_v63, 0.0 }
   0xe   :  { %49 = vadd.xlane.f32.xlu0 %v48_v26  ;;  %v228_v0 = vadd.f32 %v227_v59, %v213_v57  ;;  %v224_v1 = vadd.f32 %v223_v61, %v211_v60  ;;  %v360_v8 = vadd.f32 %v359_v3, %v351_v2  ;;  %v364_v9 = vadd.f32 %v363_v5, %v353_v4  ;;  %v687_v3 = vld [vmem:[%s2547_s0 + $0x100] sm:$0xff]  ;;  %v689_v5 = vld [vmem:[%s2547_s0 + $0x110] sm:$0xff] }
   0xf   :  { %v371_v11 = vsel %vm22_vm0, %v358_v6, 0.0  ;;  %v378_v12 = vmul.f32 %v354_v63, %v354_v63  ;;  %v367_v14 = vsel %vm22_vm0, %v356_v7, 0.0  ;;  %v376_v15 = vmul.f32 %v352_v62, %v352_v62  ;;  %v688_v63 = vld [vmem:[%s2547_s0 + $0x108] sm:$0xff] }
  0x10   :  { %v372_v16 = vadd.f32 %v371_v11, %v357_v10  ;;  %v377_v17 = vmul.f32 %v353_v4, %v353_v4  ;;  %v368_v18 = vadd.f32 %v367_v14, %v355_v13  ;;  %v375_v20 = vmul.f32 %v351_v2, %v351_v2  ;;  %v693_v11 = vld [vmem:[%s2547_s0 + $0x130] sm:$0xff]  ;;  %v691_v14 = vld [vmem:[%s2547_s0 + $0x120] sm:$0xff] }
  0x11   :  { %61 = vadd.xlane.f32.xlu1 %v60_v32  ;;  %v387_v19 = vsel %vm22_vm0, %v378_v12, 0.0  ;;  %v382_v21 = vmul.f32 %v358_v6, %v358_v6  ;;  %v383_v22 = vsel %vm22_vm0, %v376_v15, 0.0  ;;  %v380_v23 = vmul.f32 %v356_v7, %v356_v7  ;;  %v694_v7 = vld [vmem:[%s2547_s0 + $0x138] sm:$0xff] }
  0x12   :  { %57 = vadd.xlane.f32.xlu0 %v56_v33  ;;  %v388_v24 = vadd.f32 %v387_v19, %v377_v17  ;;  %v381_v25 = vmul.f32 %v357_v10, %v357_v10  ;;  %v384_v26 = vadd.f32 %v383_v22, %v375_v20  ;;  %v379_v28 = vmul.f32 %v355_v13, %v355_v13 }
  0x13   :  { %v395_v27 = vsel %vm22_vm0, %v382_v21, 0.0  ;;  %v391_v29 = vsel %vm22_vm0, %v380_v23, 0.0  ;;  %v527_v35 = vsel %vm22_vm0, %v520_v30, 0.0  ;;  %v531_v37 = vsel %vm22_vm0, %v522_v31, 0.0 }
  0x14   :  { %v396_v32 = vadd.f32 %v395_v27, %v381_v25  ;;  %v392_v33 = vadd.f32 %v391_v29, %v379_v28  ;;  %v532_v42 = vadd.f32 %v531_v37, %v521_v36  ;;  %v539_v44 = vsel %vm22_vm0, %v526_v38, 0.0  ;;  %v857_v37 = vld [vmem:[%s2547_s0 + $0x150] sm:$0xff] }
  0x15   :  { %193 = vadd.xlane.f32.xlu1 %v192_v40  ;;  %v528_v40 = vadd.f32 %v527_v35, %v519_v34  ;;  %v546_v45 = vmul.f32 %v522_v31, %v522_v31  ;;  %v535_v47 = vsel %vm22_vm0, %v524_v39, 0.0  ;;  %v540_v49 = vadd.f32 %v539_v44, %v525_v43  ;;  %v856_v31 = vld [vmem:[%s2547_s0 + $0x148] sm:$0xff]  ;;  %v855_v35 = vld [vmem:[%s2547_s0 + $0x140] sm:$0xff] }
  0x16   :  { %197 = vadd.xlane.f32.xlu0 %v196_v41  ;;  %v1494_v41 = vmov 0   ;;  %v536_v51 = vadd.f32 %v535_v47, %v523_v46  ;;  %v543_v53 = vmul.f32 %v519_v34, %v519_v34  ;;  %v550_v54 = vmul.f32 %v526_v38, %v526_v38 }
  0x17   :  { %1364 = vset.pattern.permute.xlu0 %v1494_v41  ;;  %1365 = vset.pattern.permute.xlu1 %v1494_v41  ;;  %v555_v52 = vsel %vm22_vm0, %v546_v45, 0.0  ;;  %v547_v61 = vmul.f32 %v523_v46, %v523_v46  ;;  %v695_v4 = vsel %vm22_vm0, %v688_v63, 0.0  ;;  %v707_v12 = vsel %vm22_vm0, %v694_v7, 0.0  ;;  %v859_v46 = vld [vmem:[%s2547_s0 + $0x160] sm:$0xff] }
  0x18   :  { %v563_v60 = vsel %vm22_vm0, %v550_v54, 0.0  ;;  %v708_v17 = vadd.f32 %v707_v12, %v693_v11  ;;  %v711_v21 = vmul.f32 %v687_v3, %v687_v3  ;;  %v718_v22 = vmul.f32 %v694_v7, %v694_v7  ;;  %v1030_v7 = vld [vmem:[%s2547_s0 + $0x1b8] sm:$0xff] }
  0x19   :  { %205 = vadd.xlane.f32.xlu1 %v204_v48  ;;  %v544_v48 = vmul.f32 %v520_v30, %v520_v30  ;;  %v715_v29 = vmul.f32 %v691_v14, %v691_v14  ;;  %v1043_v12 = vsel %vm22_vm0, %v1030_v7, 0.0 }
  0x1a   :  { %201 = vadd.xlane.f32.xlu0 %v200_v50  ;;  %v545_v50 = vmul.f32 %v521_v36, %v521_v36  ;;  %v731_v28 = vsel %vm22_vm0, %v718_v22, 0.0  ;;  %v863_v36 = vsel %vm22_vm0, %v856_v31, 0.0 }
  0x1b   :  { %v551_v55 = vsel %vm22_vm0, %v544_v48, 0.0  ;;  %v864_v41 = vadd.f32 %v863_v36, %v855_v35  ;;  %v880_v48 = vmul.f32 %v856_v31, %v856_v31 }
  0x1c   :  { %v556_v57 = vadd.f32 %v555_v52, %v545_v50  ;;  %v552_v59 = vadd.f32 %v551_v55, %v543_v53  ;;  %v881_v50 = vmul.f32 %v857_v37, %v857_v37  ;;  %v879_v53 = vmul.f32 %v855_v35, %v855_v35 }
  0x1d   :  { %221 = vadd.xlane.f32.xlu1 %v220_v56  ;;  %v548_v56 = vmul.f32 %v524_v39, %v524_v39  ;;  %v862_v39 = vld [vmem:[%s2547_s0 + $0x178] sm:$0xff]  ;;  %v887_v55 = vsel %vm22_vm0, %v880_v48, 0.0 }
  0x1e   :  { %217 = vadd.xlane.f32.xlu0 %v216_v58  ;;  %v549_v58 = vmul.f32 %v525_v43, %v525_v43  ;;  %v861_v43 = vld [vmem:[%s2547_s0 + $0x170] sm:$0xff]  ;;  %v875_v44 = vsel %vm22_vm0, %v862_v39, 0.0  ;;  %v886_v54 = vmul.f32 %v862_v39, %v862_v39 }
  0x1f   :  { %v559_v62 = vsel %vm22_vm0, %v548_v56, 0.0 }
  0x20   :  { %v560_v2 = vadd.f32 %v559_v62, %v547_v61  ;;  %v883_v61 = vmul.f32 %v859_v46, %v859_v46 }
  0x21   :  { %229 = vadd.xlane.f32.xlu1 %v228_v0  ;;  %v690_v0 = vld [vmem:[%s2547_s0 + $0x118] sm:$0xff] }
  0x22   :  { %225 = vadd.xlane.f32.xlu0 %v224_v1  ;;  %v564_v1 = vadd.f32 %v563_v60, %v549_v58  ;;  %v699_v6 = vsel %vm22_vm0, %v690_v0, 0.0  ;;  %v714_v13 = vmul.f32 %v690_v0, %v690_v0  ;;  %v885_v58 = vmul.f32 %v861_v43, %v861_v43  ;;  %v1026_v0 = vld [vmem:[%s2547_s0 + $0x198] sm:$0xff] }
  0x23   :  { %v700_v10 = vadd.f32 %v699_v6, %v689_v5  ;;  %v899_v60 = vsel %vm22_vm0, %v886_v54, 0.0  ;;  %v1035_v6 = vsel %vm22_vm0, %v1026_v0, 0.0 }
  0x24   :  { %v723_v20 = vsel %vm22_vm0, %v714_v13, 0.0  ;;  %v1027_v13 = vld [vmem:[%s2547_s0 + $0x1a0] sm:$0xff] }
  0x25   :  { %361 = vadd.xlane.f32.xlu1 %v360_v8  ;;  %v692_v8 = vld [vmem:[%s2547_s0 + $0x128] sm:$0xff] }
  0x26   :  { %365 = vadd.xlane.f32.xlu0 %v364_v9  ;;  %v696_v9 = vadd.f32 %v695_v4, %v687_v3  ;;  %v703_v15 = vsel %vm22_vm0, %v692_v8, 0.0  ;;  %v1023_v3 = vld [vmem:[%s2547_s0 + $0x180] sm:$0xff] }
  0x27   :  { %v704_v19 = vadd.f32 %v703_v15, %v691_v14  ;;  %v1194_v15 = vld [vmem:[%s2547_s0 + $0x1d8] sm:$0xff] }
  0x29   :  { %373 = vadd.xlane.f32.xlu1 %v372_v16  ;;  %v712_v16 = vmul.f32 %v688_v63, %v688_v63  ;;  %v1024_v63 = vld [vmem:[%s2547_s0 + $0x188] sm:$0xff] }
  0x2a   :  { %369 = vadd.xlane.f32.xlu0 %v368_v18  ;;  %v713_v18 = vmul.f32 %v689_v5, %v689_v5  ;;  %v1031_v4 = vsel %vm22_vm0, %v1024_v63, 0.0  ;;  %v1025_v5 = vld [vmem:[%s2547_s0 + $0x190] sm:$0xff] }
  0x2b   :  { %v719_v23 = vsel %vm22_vm0, %v712_v16, 0.0  ;;  %v1192_v16 = vld [vmem:[%s2547_s0 + $0x1c8] sm:$0xff] }
  0x2c   :  { %v724_v25 = vadd.f32 %v723_v20, %v713_v18  ;;  %v720_v27 = vadd.f32 %v719_v23, %v711_v21  ;;  %v1203_v20 = vsel %vm22_vm0, %v1194_v15, 0.0  ;;  %v1191_v21 = vld [vmem:[%s2547_s0 + $0x1c0] sm:$0xff]  ;;  %v1199_v22 = vsel %vm22_vm0, %v1192_v16, 0.0  ;;  %v1198_v23 = vld [vmem:[%s2547_s0 + $0x1f8] sm:$0xff] }
  0x2d   :  { %389 = vadd.xlane.f32.xlu1 %v388_v24  ;;  %v716_v24 = vmul.f32 %v692_v8, %v692_v8  ;;  %v1028_v8 = vld [vmem:[%s2547_s0 + $0x1a8] sm:$0xff]  ;;  %v1216_v48 = vmul.f32 %v1192_v16, %v1192_v16  ;;  %v1222_v54 = vmul.f32 %v1198_v23, %v1198_v23 }
  0x2e   :  { %385 = vadd.xlane.f32.xlu0 %v384_v26  ;;  %v717_v26 = vmul.f32 %v693_v11, %v693_v11  ;;  %v1029_v11 = vld [vmem:[%s2547_s0 + $0x1b0] sm:$0xff]  ;;  %v1039_v14 = vsel %vm22_vm0, %v1028_v8, 0.0 }
  0x2f   :  { %v727_v30 = vsel %vm22_vm0, %v716_v24, 0.0  ;;  %v1040_v18 = vadd.f32 %v1039_v14, %v1027_v13  ;;  %v1196_v24 = vld [vmem:[%s2547_s0 + $0x1e8] sm:$0xff] }
  0x30   :  { %v728_v34 = vadd.f32 %v727_v30, %v715_v29  ;;  %v1050_v29 = vmul.f32 %v1026_v0, %v1026_v0  ;;  %v1195_v30 = vld [vmem:[%s2547_s0 + $0x1e0] sm:$0xff]  ;;  %v1207_v31 = vsel %vm22_vm0, %v1196_v24, 0.0 }
  0x31   :  { %397 = vadd.xlane.f32.xlu1 %v396_v32  ;;  %v858_v32 = vld [vmem:[%s2547_s0 + $0x158] sm:$0xff]  ;;  %v1208_v35 = vadd.f32 %v1207_v31, %v1195_v30 }
  0x32   :  { %393 = vadd.xlane.f32.xlu0 %v392_v33  ;;  %v732_v33 = vadd.f32 %v731_v28, %v717_v26  ;;  %v867_v38 = vsel %vm22_vm0, %v858_v32, 0.0  ;;  %v882_v45 = vmul.f32 %v858_v32, %v858_v32  ;;  %v1200_v26 = vadd.f32 %v1199_v22, %v1191_v21 }
  0x33   :  { %v1211_v28 = vsel %vm22_vm0, %v1198_v23, 0.0  ;;  %v1048_v32 = vmul.f32 %v1024_v63, %v1024_v63  ;;  %v1059_v36 = vsel %vm22_vm0, %v1050_v29, 0.0 }
  0x34   :  { %v891_v52 = vsel %vm22_vm0, %v882_v45, 0.0  ;;  %v1051_v45 = vmul.f32 %v1027_v13, %v1027_v13 }
  0x35   :  { %529 = vadd.xlane.f32.xlu1 %v528_v40  ;;  %v860_v40 = vld [vmem:[%s2547_s0 + $0x168] sm:$0xff]  ;;  %v1055_v39 = vsel %vm22_vm0, %v1048_v32, 0.0 }
  0x36   :  { %533 = vadd.xlane.f32.xlu0 %v532_v42  ;;  %v868_v42 = vadd.f32 %v867_v38, %v857_v37  ;;  %v871_v47 = vsel %vm22_vm0, %v860_v40, 0.0  ;;  %v884_v56 = vmul.f32 %v860_v40, %v860_v40  ;;  %v1047_v37 = vmul.f32 %v1023_v3, %v1023_v3 }
  0x37   :  { %v1054_v38 = vmul.f32 %v1030_v7, %v1030_v7  ;;  %v1052_v40 = vmul.f32 %v1028_v8, %v1028_v8 }
  0x38   :  { %v895_v62 = vsel %vm22_vm0, %v884_v56, 0.0  ;;  %v1220_v56 = vmul.f32 %v1196_v24, %v1196_v24 }
  0x39   :  { %541 = vadd.xlane.f32.xlu1 %v540_v49  ;;  %v876_v49 = vadd.f32 %v875_v44, %v861_v43  ;;  %v1056_v43 = vadd.f32 %v1055_v39, %v1047_v37  ;;  %v1067_v44 = vsel %vm22_vm0, %v1054_v38, 0.0 }
  0x3a   :  { %537 = vadd.xlane.f32.xlu0 %v536_v51  ;;  %v872_v51 = vadd.f32 %v871_v47, %v859_v46  ;;  %v1218_v46 = vmul.f32 %v1194_v15, %v1194_v15  ;;  %v1063_v47 = vsel %vm22_vm0, %v1052_v40, 0.0 }
  0x3d   :  { %557 = vadd.xlane.f32.xlu1 %v556_v57  ;;  %v892_v57 = vadd.f32 %v891_v52, %v881_v50  ;;  %v1227_v52 = vsel %vm22_vm0, %v1218_v46, 0.0 }
  0x3e   :  { %553 = vadd.xlane.f32.xlu0 %v552_v59  ;;  %v888_v59 = vadd.f32 %v887_v55, %v879_v53  ;;  %v1215_v53 = vmul.f32 %v1191_v21, %v1191_v21  ;;  %v1223_v55 = vsel %vm22_vm0, %v1216_v48, 0.0 }
  0x41   :  { %565 = vadd.xlane.f32.xlu1 %v564_v1  ;;  %v900_v1 = vadd.f32 %v899_v60, %v885_v58  ;;  %v1235_v60 = vsel %vm22_vm0, %v1222_v54, 0.0 }
  0x42   :  { %561 = vadd.xlane.f32.xlu0 %v560_v2  ;;  %v896_v2 = vadd.f32 %v895_v62, %v883_v61  ;;  %v1219_v61 = vmul.f32 %v1195_v30, %v1195_v30  ;;  %v1231_v62 = vsel %vm22_vm0, %v1220_v56, 0.0 }
  0x44   :  { %v1232_v0 = vadd.f32 %v1231_v62, %v1219_v61  ;;  %v93_v61 = vld [vmem:[%s2548_s1 + $0x10] sm:$0xff] }
  0x45   :  { %697 = vadd.xlane.f32.xlu1 %v696_v9  ;;  %v1032_v9 = vadd.f32 %v1031_v4, %v1023_v3 }
  0x46   :  { %701 = vadd.xlane.f32.xlu0 %v700_v10  ;;  %v1036_v10 = vadd.f32 %v1035_v6, %v1025_v5 }
  0x49   :  { %709 = vadd.xlane.f32.xlu1 %v708_v17  ;;  %v1044_v17 = vadd.f32 %v1043_v12, %v1029_v11 }
  0x4a   :  { %705 = vadd.xlane.f32.xlu0 %v704_v19  ;;  %v1193_v19 = vld [vmem:[%s2547_s0 + $0x1d0] sm:$0xff] }
  0x4b   :  { %v1217_v50 = vmul.f32 %v1193_v19, %v1193_v19 }
  0x4d   :  { %725 = vadd.xlane.f32.xlu1 %v724_v25  ;;  %v1204_v25 = vadd.f32 %v1203_v20, %v1193_v19 }
  0x4e   :  { %721 = vadd.xlane.f32.xlu0 %v720_v27  ;;  %v1197_v27 = vld [vmem:[%s2547_s0 + $0x1f0] sm:$0xff] }
  0x4f   :  { %v1221_v58 = vmul.f32 %v1197_v27, %v1197_v27 }
  0x51   :  { %733 = vadd.xlane.f32.xlu1 %v732_v33  ;;  %v1212_v33 = vadd.f32 %v1211_v28, %v1197_v27  ;;  %v1236_v63 = vadd.f32 %v1235_v60, %v1221_v58 }
  0x52   :  { %729 = vadd.xlane.f32.xlu0 %v728_v34  ;;  %v1049_v34 = vmul.f32 %v1025_v5, %v1025_v5 }
  0x55   :  { %865 = vadd.xlane.f32.xlu1 %v864_v41  ;;  %v1060_v41 = vadd.f32 %v1059_v36, %v1049_v34 }
  0x56   :  { %869 = vadd.xlane.f32.xlu0 %v868_v42  ;;  %v1053_v42 = vmul.f32 %v1029_v11, %v1029_v11 }
  0x59   :  { %877 = vadd.xlane.f32.xlu1 %v876_v49  ;;  %v1068_v49 = vadd.f32 %v1067_v44, %v1053_v42  ;;  %v92_v44 = vld [vmem:[%s2548_s1 + $0x8] sm:$0xff] }
  0x5a   :  { %873 = vadd.xlane.f32.xlu0 %v872_v51  ;;  %v1064_v51 = vadd.f32 %v1063_v47, %v1051_v45  ;;  %v91_v47 = vld [vmem:[%s2548_s1] sm:$0xff] }
  0x5d   :  { %893 = vadd.xlane.f32.xlu1 %v892_v57  ;;  %v1228_v57 = vadd.f32 %v1227_v52, %v1217_v50 }
  0x5e   :  { %889 = vadd.xlane.f32.xlu0 %v888_v59  ;;  %v1224_v59 = vadd.f32 %v1223_v55, %v1215_v53 }
  0x61   :  { %901 = vadd.xlane.f32.xlu1 %v900_v1 }
  0x62   :  { %897 = vadd.xlane.f32.xlu0 %v896_v2 }
  0x65   :  { %1033 = vadd.xlane.f32.xlu1 %v1032_v9 }
  0x66   :  { %1037 = vadd.xlane.f32.xlu0 %v1036_v10 }
  0x69   :  { %1045 = vadd.xlane.f32.xlu1 %v1044_v17 }
  0x6a   :  { %1041 = vadd.xlane.f32.xlu0 %v1040_v18 }
  0x6d   :  { %1205 = vadd.xlane.f32.xlu1 %v1204_v25 }
  0x6e   :  { %1201 = vadd.xlane.f32.xlu0 %v1200_v26 }
  0x71   :  { %1213 = vadd.xlane.f32.xlu1 %v1212_v33 }
  0x72   :  { %1209 = vadd.xlane.f32.xlu0 %v1208_v35 }
  0x75   :  { %1061 = vadd.xlane.f32.xlu1 %v1060_v41 }
  0x76   :  { %1057 = vadd.xlane.f32.xlu0 %v1056_v43 }
  0x79   :  { %1069 = vadd.xlane.f32.xlu1 %v1068_v49 }
  0x7a   :  { %1065 = vadd.xlane.f32.xlu0 %v1064_v51 }
  0x7d   :  { %1229 = vadd.xlane.f32.xlu1 %v1228_v57 }
  0x7e   :  { %1225 = vadd.xlane.f32.xlu0 %v1224_v59 }
  0x81   :  { %1237 = vadd.xlane.f32.xlu1 %v1236_v63 }
  0x82   :  { %1233 = vadd.xlane.f32.xlu0 %v1232_v0 }
  0x92   :  { %v34_v1 = vpop.xlane.xlu1 %33 }
  0x93   :  { %v26_v2 = vpop.xlane.xlu0 %25  ;;  %v1779_v12 = vmul.f32 0.0051020407, %v34_v1 }
  0x94   :  { %v1771_v5 = vmul.f32 0.0051020407, %v26_v2 }
  0x95   :  { %v73_v22 = vmul.f32 %v1779_v12, %v1779_v12 }
  0x96   :  { %v38_v3 = vpop.xlane.xlu1 %37  ;;  %v71_v13 = vmul.f32 %v1771_v5, %v1771_v5 }
  0x97   :  { %v30_v4 = vpop.xlane.xlu0 %29  ;;  %v1775_v8 = vmul.f32 0.0051020407, %v38_v3 }
  0x98   :  { %v1773_v6 = vmul.f32 0.0051020407, %v30_v4 }
  0x99   :  { %v74_v18 = vmul.f32 %v1775_v8, %v1775_v8 }
  0x9a   :  { %v54_v7 = vpop.xlane.xlu1 %53  ;;  %v72_v9 = vmul.f32 %v1773_v6, %v1773_v6 }
  0x9b   :  { %v68_v10 = vmul.f32 0.0051020407, %v54_v7  ;;  %v50_v11 = vpop.xlane.xlu0 %49 }
  0x9c   :  { %v67_v14 = vmul.f32 0.0051020407, %v50_v11 }
  0x9d   :  { %v76_v15 = vsub.f32 %v68_v10, %v72_v9 }
  0x9e   :  { %v75_v16 = vsub.f32 %v67_v14, %v71_v13  ;;  %v62_v17 = vpop.xlane.xlu1 %61  ;;  %v94_v13 = vld [vmem:[%s2548_s1 + $0x18] sm:$0xff] }
  0x9f   :  { %v80_v19 = vmax.f32 %v76_v15, 0.0  ;;  %v70_v20 = vmul.f32 0.0051020407, %v62_v17  ;;  %v58_v21 = vpop.xlane.xlu0 %57 }
  0xa0   :  { %v79_v23 = vmax.f32 %v75_v16, 0.0  ;;  %v69_v24 = vmul.f32 0.0051020407, %v58_v21 }
  0xa1   :  { %v84_v25 = vadd.f32 1e-05, %v80_v19  ;;  %v78_v26 = vsub.f32 %v70_v20, %v74_v18 }
  0xa2   :  { %v83_v27 = vadd.f32 1e-05, %v79_v23  ;;  %v77_v28 = vsub.f32 %v69_v24, %v73_v22  ;;  %v194_v29 = vpop.xlane.xlu1 %193  ;;  %v99_v22 = vld [vmem:[%s2549_s2] sm:$0xff] }
  0xa3   :  { %1366 = vrsqrt.f32 %v84_v25  ;;  %v82_v30 = vmax.f32 %v78_v26, 0.0  ;;  %v198_v31 = vpop.xlane.xlu0 %197  ;;  %v1789_v38 = vmul.f32 0.0051020407, %v194_v29 }
  0xa4   :  { %1368 = vrsqrt.f32 %v83_v27  ;;  %v81_v32 = vmax.f32 %v77_v28, 0.0  ;;  %v1787_v36 = vmul.f32 0.0051020407, %v198_v31  ;;  %v100_v27 = vld [vmem:[%s2549_s2 + $0x8] sm:$0xff] }
  0xa5   :  { %v86_v33 = vadd.f32 1e-05, %v82_v30  ;;  %v239_v45 = vmul.f32 %v1789_v38, %v1789_v38 }
  0xa6   :  { %v85_v34 = vadd.f32 1e-05, %v81_v32  ;;  %v206_v35 = vpop.xlane.xlu1 %205  ;;  %v240_v40 = vmul.f32 %v1787_v36, %v1787_v36 }
  0xa7   :  { %v202_v37 = vpop.xlane.xlu0 %201  ;;  %v1793_v41 = vmul.f32 0.0051020407, %v206_v35 }
  0xa8   :  { %1370 = vrsqrt.f32 %v85_v34  ;;  %v1803_v51 = vmul.f32 0.0051020407, %v202_v37 }
  0xa9   :  { %1372 = vrsqrt.f32 %v86_v33  ;;  %v242_v55 = vmul.f32 %v1793_v41, %v1793_v41  ;;  %v260_v33 = vld [vmem:[%s2548_s1 + $0x28] sm:$0xff] }
  0xaa   :  { %v222_v39 = vpop.xlane.xlu1 %221  ;;  %v241_v4 = vmul.f32 %v1803_v51, %v1803_v51 }
  0xab   :  { %v236_v42 = vmul.f32 0.0051020407, %v222_v39  ;;  %v218_v43 = vpop.xlane.xlu0 %217 }
  0xac   :  { %v235_v46 = vmul.f32 0.0051020407, %v218_v43 }
  0xad   :  { %v1367_v48 = vpop.eup %1366  ;;  %v244_v49 = vsub.f32 %v236_v42, %v240_v40 }
  0xae   :  { %v1369_v50 = vpop.eup %1368  ;;  %v243_v52 = vsub.f32 %v235_v46, %v239_v45  ;;  %v230_v53 = vpop.xlane.xlu1 %229  ;;  %v96_v54 = vmul.f32 %v1367_v48, %v92_v44 }
  0xaf   :  { %v248_v56 = vmax.f32 %v244_v49, 0.0  ;;  %v238_v57 = vmul.f32 0.0051020407, %v230_v53  ;;  %v226_v58 = vpop.xlane.xlu0 %225  ;;  %v95_v59 = vmul.f32 %v1369_v50, %v91_v47  ;;  %v262_v53 = vld [vmem:[%s2548_s1 + $0x38] sm:$0xff] }
  0xb0   :  { %v247_v60 = vmax.f32 %v243_v52, 0.0  ;;  %118 = vperm.xlu1 %1365, %v96_v54   ;;  %v237_v0 = vmul.f32 0.0051020407, %v226_v58  ;;  %v104_v24 = vmul.f32 %v96_v54, %v1773_v6  ;;  %v259_v6 = vld [vmem:[%s2548_s1 + $0x20] sm:$0xff]  ;;  %v101_v52 = vld [vmem:[%s2549_s2 + $0x10] sm:$0xff] }
  0xb1   :  { %v252_v62 = vadd.f32 1e-05, %v248_v56  ;;  %v246_v63 = vsub.f32 %v238_v57, %v242_v55  ;;  %113 = vperm.xlu0 %1364, %v95_v59   ;;  %v103_v20 = vmul.f32 %v95_v59, %v1771_v5 }
  0xb2   :  { %v1371_v1 = vpop.eup %1370  ;;  %v251_v2 = vadd.f32 1e-05, %v247_v60  ;;  %v362_v3 = vpop.xlane.xlu1 %361  ;;  %v245_v15 = vsub.f32 %v237_v0, %v241_v4  ;;  %v108_v39 = vsub.f32 %v100_v27, %v104_v24 }
  0xb3   :  { %1374 = vrsqrt.f32 %v252_v62  ;;  %v250_v7 = vmax.f32 %v246_v63, 0.0  ;;  %v366_v9 = vpop.xlane.xlu0 %365  ;;  %v97_v10 = vmul.f32 %v1371_v1, %v93_v61  ;;  %v1373_v11 = vpop.eup %1372  ;;  %v1818_v21 = vmul.f32 0.0051020407, %v362_v3  ;;  %v102_v3 = vld [vmem:[%s2549_s2 + $0x18] sm:$0xff] }
  0xb4   :  { %1376 = vrsqrt.f32 %v251_v2  ;;  %v1815_v17 = vmul.f32 0.0051020407, %v366_v9  ;;  %v98_v19 = vmul.f32 %v1373_v11, %v94_v13  ;;  %v249_v23 = vmax.f32 %v245_v15, 0.0 }
  0xb5   :  { %v254_v14 = vadd.f32 1e-05, %v250_v7  ;;  %123 = vperm.xlu1 %1365, %v97_v10   ;;  %v107_v30 = vsub.f32 %v99_v22, %v103_v20  ;;  %v407_v31 = vmul.f32 %v1818_v21, %v1818_v21  ;;  %v105_v46 = vmul.f32 %v97_v10, %v1779_v12  ;;  %v268_v7 = vld [vmem:[%s2549_s2 + $0x28] sm:$0xff] }
  0xb6   :  { %v374_v16 = vpop.xlane.xlu1 %373  ;;  %v408_v5 = vmul.f32 %v1815_v17, %v1815_v17  ;;  %v253_v35 = vadd.f32 1e-05, %v249_v23  ;;  %v106_v63 = vmul.f32 %v98_v19, %v1775_v8 }
  0xb7   :  { %1378 = vrsqrt.f32 %v254_v14  ;;  %v370_v18 = vpop.xlane.xlu0 %369  ;;  %v1824_v25 = vmul.f32 0.0051020407, %v374_v16  ;;  %v109_v61 = vsub.f32 %v101_v52, %v105_v46 }
  0xb8   :  { %v1841_v43 = vmul.f32 0.0051020407, %v370_v18  ;;  %1380 = vrsqrt.f32 %v253_v35  ;;  %v110_v11 = vsub.f32 %v102_v3, %v106_v63 }
  0xb9   :  { %128 = vperm.xlu1 %1365, %v98_v19   ;;  %v410_v42 = vmul.f32 %v1824_v25, %v1824_v25 }
  0xba   :  { %v390_v26 = vpop.xlane.xlu1 %389  ;;  %v409_v0 = vmul.f32 %v1841_v43, %v1841_v43 }
  0xbb   :  { %v404_v28 = vmul.f32 0.0051020407, %v390_v26  ;;  %v386_v29 = vpop.xlane.xlu0 %385 }
  0xbc   :  { %v403_v32 = vmul.f32 0.0051020407, %v386_v29 }
  0xbd   :  { %v1375_v34 = vpop.eup %1374  ;;  %v412_v37 = vsub.f32 %v404_v28, %v408_v5  ;;  %141 = vperm.xlu1 %1365, %v107_v30   ;;  %v427_v30 = vld [vmem:[%s2548_s1 + $0x40] sm:$0xff] }
  0xbe   :  { %v1377_v40 = vpop.eup %1376  ;;  %v411_v44 = vsub.f32 %v403_v32, %v407_v31  ;;  %v398_v45 = vpop.xlane.xlu1 %397  ;;  %v264_v54 = vmul.f32 %v1375_v34, %v260_v33  ;;  %v428_v31 = vld [vmem:[%s2548_s1 + $0x48] sm:$0xff] }
  0xbf   :  { %v416_v47 = vmax.f32 %v412_v37, 0.0  ;;  %v406_v48 = vmul.f32 0.0051020407, %v398_v45  ;;  %v394_v49 = vpop.xlane.xlu0 %393  ;;  %v263_v50 = vmul.f32 %v1377_v40, %v259_v6 }
  0xc0   :  { %v415_v55 = vmax.f32 %v411_v44, 0.0  ;;  %v405_v59 = vmul.f32 0.0051020407, %v394_v49  ;;  %v272_v4 = vmul.f32 %v264_v54, %v1787_v36  ;;  %v270_v36 = vld [vmem:[%s2549_s2 + $0x38] sm:$0xff]  ;;  %v267_v49 = vld [vmem:[%s2549_s2 + $0x20] sm:$0xff] }
  0xc1   :  { %v1379_v56 = vpop.eup %1378  ;;  %v420_v57 = vadd.f32 1e-05, %v416_v47  ;;  %v414_v58 = vsub.f32 %v406_v48, %v410_v42  ;;  %146 = vperm.xlu1 %1365, %v108_v39   ;;  %281 = vperm.xlu0 %1364, %v263_v50   ;;  %v271_v34 = vmul.f32 %v263_v50, %v1789_v38  ;;  %v430_v38 = vld [vmem:[%s2548_s1 + $0x58] sm:$0xff] }
  0xc2   :  { %v419_v12 = vadd.f32 1e-05, %v415_v55  ;;  %v530_v60 = vpop.xlane.xlu1 %529  ;;  %v266_v62 = vmul.f32 %v1379_v56, %v262_v53  ;;  %v413_v10 = vsub.f32 %v405_v59, %v409_v0  ;;  %v276_v15 = vsub.f32 %v268_v7, %v272_v4  ;;  %v1381_v23 = vpop.eup %1380  ;;  %v269_v0 = vld [vmem:[%s2549_s2 + $0x30] sm:$0xff] }
  0xc3   :  { %1382 = vrsqrt.f32 %v420_v57  ;;  %v418_v1 = vmax.f32 %v414_v58, 0.0  ;;  %v534_v2 = vpop.xlane.xlu0 %533  ;;  %v1863_v18 = vmul.f32 0.0051020407, %v530_v60  ;;  %v275_v59 = vsub.f32 %v267_v49, %v271_v34 }
  0xc4   :  { %1384 = vrsqrt.f32 %v419_v12  ;;  %v1860_v13 = vmul.f32 0.0051020407, %v534_v2  ;;  %v274_v16 = vmul.f32 %v266_v62, %v1793_v41  ;;  %v417_v19 = vmax.f32 %v413_v10, 0.0  ;;  %v261_v41 = vld [vmem:[%s2548_s1 + $0x30] sm:$0xff]  ;;  %v436_v2 = vld [vmem:[%s2549_s2 + $0x48] sm:$0xff] }
  0xc5   :  { %v422_v9 = vadd.f32 1e-05, %v418_v1  ;;  %151 = vperm.xlu1 %1365, %v109_v61   ;;  %296 = vperm.xlu0 %1364, %v266_v62   ;;  %v575_v28 = vmul.f32 %v1863_v18, %v1863_v18  ;;  %v265_v44 = vmul.f32 %v1381_v23, %v261_v41  ;;  %v595_v41 = vld [vmem:[%s2548_s1 + $0x60] sm:$0xff] }
  0xc6   :  { %v542_v8 = vpop.xlane.xlu1 %541  ;;  %v576_v24 = vmul.f32 %v1860_v13, %v1860_v13  ;;  %v278_v5 = vsub.f32 %v270_v36, %v274_v16  ;;  %v421_v6 = vadd.f32 1e-05, %v417_v19 }
  0xc7   :  { %1386 = vrsqrt.f32 %v422_v9  ;;  %v538_v14 = vpop.xlane.xlu0 %537  ;;  %v1868_v20 = vmul.f32 0.0051020407, %v542_v8  ;;  %v273_v60 = vmul.f32 %v265_v44, %v1803_v51 }
  0xc8   :  { %v1886_v39 = vmul.f32 0.0051020407, %v538_v14  ;;  %1388 = vrsqrt.f32 %v421_v6 }
  0xc9   :  { %156 = vperm.xlu1 %1365, %v110_v11   ;;  %314 = vperm.xlu0 %1364, %v276_v15   ;;  %v578_v37 = vmul.f32 %v1868_v20, %v1868_v20  ;;  %v277_v7 = vsub.f32 %v269_v0, %v273_v60 }
  0xca   :  { %v558_v22 = vpop.xlane.xlu1 %557  ;;  %v577_v61 = vmul.f32 %v1886_v39, %v1886_v39 }
  0xcb   :  { %v572_v26 = vmul.f32 0.0051020407, %v558_v22  ;;  %v554_v27 = vpop.xlane.xlu0 %553 }
  0xcc   :  { %v571_v29 = vmul.f32 0.0051020407, %v554_v27 }
  0xcd   :  { %v1383_v32 = vpop.eup %1382  ;;  %v580_v33 = vsub.f32 %v572_v26, %v576_v24  ;;  %286 = vperm.xlu1 %1365, %v264_v54   ;;  %324 = vperm.xlu0 %1364, %v278_v5  }
  0xce   :  { %v1385_v35 = vpop.eup %1384  ;;  %v579_v40 = vsub.f32 %v571_v29, %v575_v28  ;;  %v566_v42 = vpop.xlane.xlu1 %565  ;;  %v432_v50 = vmul.f32 %v1383_v32, %v428_v31  ;;  %v596_v28 = vld [vmem:[%s2548_s1 + $0x68] sm:$0xff] }
  0xcf   :  { %v584_v45 = vmax.f32 %v580_v33, 0.0  ;;  %v574_v46 = vmul.f32 0.0051020407, %v566_v42  ;;  %v562_v47 = vpop.xlane.xlu0 %561  ;;  %v431_v48 = vmul.f32 %v1385_v35, %v427_v30 }
  0xd0   :  { %v583_v52 = vmax.f32 %v579_v40, 0.0  ;;  %v573_v56 = vmul.f32 0.0051020407, %v562_v47  ;;  %v440_v1 = vmul.f32 %v432_v50, %v1815_v17  ;;  %v438_v17 = vld [vmem:[%s2549_s2 + $0x58] sm:$0xff]  ;;  %v435_v47 = vld [vmem:[%s2549_s2 + $0x40] sm:$0xff] }
  0xd1   :  { %v1387_v53 = vpop.eup %1386  ;;  %v588_v54 = vadd.f32 1e-05, %v584_v45  ;;  %v582_v55 = vsub.f32 %v574_v46, %v578_v37  ;;  %291 = vperm.xlu1 %1365, %v265_v44   ;;  %449 = vperm.xlu0 %1364, %v431_v48   ;;  %v439_v32 = vmul.f32 %v431_v48, %v1818_v21  ;;  %v598_v21 = vld [vmem:[%s2548_s1 + $0x78] sm:$0xff] }
  0xd2   :  { %v587_v57 = vadd.f32 1e-05, %v583_v52  ;;  %v698_v58 = vpop.xlane.xlu1 %697  ;;  %v434_v12 = vmul.f32 %v1387_v53, %v430_v38  ;;  %v581_v4 = vsub.f32 %v573_v56, %v577_v61  ;;  %v444_v8 = vsub.f32 %v436_v2, %v440_v1  ;;  %v1389_v19 = vpop.eup %1388  ;;  %v437_v61 = vld [vmem:[%s2549_s2 + $0x50] sm:$0xff] }
  0xd3   :  { %1390 = vrsqrt.f32 %v588_v54  ;;  %v586_v62 = vmax.f32 %v582_v55, 0.0  ;;  %v702_v63 = vpop.xlane.xlu0 %701  ;;  %v1907_v14 = vmul.f32 0.0051020407, %v698_v58  ;;  %v443_v56 = vsub.f32 %v435_v47, %v439_v32 }
  0xd4   :  { %1392 = vrsqrt.f32 %v587_v57  ;;  %v1904_v9 = vmul.f32 0.0051020407, %v702_v63  ;;  %v442_v11 = vmul.f32 %v434_v12, %v1824_v25  ;;  %v585_v15 = vmax.f32 %v581_v4, 0.0  ;;  %v429_v25 = vld [vmem:[%s2548_s1 + $0x50] sm:$0xff]  ;;  %v604_v63 = vld [vmem:[%s2549_s2 + $0x68] sm:$0xff] }
  0xd5   :  { %v590_v3 = vadd.f32 1e-05, %v586_v62  ;;  %309 = vperm.xlu1 %1365, %v275_v59   ;;  %464 = vperm.xlu0 %1364, %v434_v12   ;;  %v743_v27 = vmul.f32 %v1907_v14, %v1907_v14  ;;  %v433_v40 = vmul.f32 %v1389_v19, %v429_v25 }
  0xd6   :  { %v710_v51 = vpop.xlane.xlu1 %709  ;;  %v744_v22 = vmul.f32 %v1904_v9, %v1904_v9  ;;  %v446_v26 = vsub.f32 %v438_v17, %v442_v11  ;;  %v589_v30 = vadd.f32 1e-05, %v585_v15 }
  0xd7   :  { %1394 = vrsqrt.f32 %v590_v3  ;;  %v706_v10 = vpop.xlane.xlu0 %705  ;;  %v1912_v16 = vmul.f32 0.0051020407, %v710_v51  ;;  %v441_v58 = vmul.f32 %v433_v40, %v1841_v43 }
  0xd8   :  { %v1930_v34 = vmul.f32 0.0051020407, %v706_v10  ;;  %1396 = vrsqrt.f32 %v589_v30 }
  0xd9   :  { %319 = vperm.xlu1 %1365, %v277_v7   ;;  %482 = vperm.xlu0 %1364, %v444_v8   ;;  %v746_v33 = vmul.f32 %v1912_v16, %v1912_v16  ;;  %v445_v2 = vsub.f32 %v437_v61, %v441_v58  ;;  %v605_v61 = vld [vmem:[%s2549_s2 + $0x70] sm:$0xff] }
  0xda   :  { %v726_v36 = vpop.xlane.xlu1 %725  ;;  %v745_v59 = vmul.f32 %v1930_v34, %v1930_v34 }
  0xdb   :  { %v740_v23 = vmul.f32 0.0051020407, %v726_v36  ;;  %v722_v24 = vpop.xlane.xlu0 %721 }
  0xdc   :  { %v739_v5 = vmul.f32 0.0051020407, %v722_v24 }
  0xdd   :  { %v1391_v29 = vpop.eup %1390  ;;  %v748_v31 = vsub.f32 %v740_v23, %v744_v22  ;;  %454 = vperm.xlu1 %1365, %v432_v50   ;;  %492 = vperm.xlu0 %1364, %v446_v26  }
  0xde   :  { %v1393_v6 = vpop.eup %1392  ;;  %v747_v35 = vsub.f32 %v739_v5, %v743_v27  ;;  %v734_v37 = vpop.xlane.xlu1 %733  ;;  %v600_v48 = vmul.f32 %v1391_v29, %v596_v28  ;;  %v763_v27 = vld [vmem:[%s2548_s1 + $0x80] sm:$0xff]  ;;  %v764_v5 = vld [vmem:[%s2548_s1 + $0x88] sm:$0xff] }
  0xdf   :  { %v752_v42 = vmax.f32 %v748_v31, 0.0  ;;  %v742_v44 = vmul.f32 0.0051020407, %v734_v37  ;;  %v730_v45 = vpop.xlane.xlu0 %729  ;;  %v599_v46 = vmul.f32 %v1393_v6, %v595_v41 }
  0xe0   :  { %v751_v49 = vmax.f32 %v747_v35, 0.0  ;;  %v741_v53 = vmul.f32 0.0051020407, %v730_v45  ;;  %v608_v62 = vmul.f32 %v600_v48, %v1860_v13  ;;  %v606_v13 = vld [vmem:[%s2549_s2 + $0x78] sm:$0xff] }
  0xe1   :  { %v1395_v38 = vpop.eup %1394  ;;  %v756_v50 = vadd.f32 1e-05, %v752_v42  ;;  %v750_v52 = vsub.f32 %v742_v44, %v746_v33  ;;  %459 = vperm.xlu1 %1365, %v433_v40   ;;  %617 = vperm.xlu0 %1364, %v599_v46   ;;  %v607_v31 = vmul.f32 %v599_v46, %v1863_v18  ;;  %v766_v45 = vld [vmem:[%s2548_s1 + $0x98] sm:$0xff]  ;;  %v603_v46 = vld [vmem:[%s2549_s2 + $0x60] sm:$0xff] }
  0xe2   :  { %v755_v54 = vadd.f32 1e-05, %v751_v49  ;;  %v866_v55 = vpop.xlane.xlu1 %865  ;;  %v602_v57 = vmul.f32 %v1395_v38, %v598_v21  ;;  %v749_v1 = vsub.f32 %v741_v53, %v745_v59  ;;  %v612_v51 = vsub.f32 %v604_v63, %v608_v62  ;;  %v1397_v15 = vpop.eup %1396  ;;  %v772_v62 = vld [vmem:[%s2549_s2 + $0x88] sm:$0xff] }
  0xe3   :  { %1398 = vrsqrt.f32 %v756_v50  ;;  %v754_v12 = vmax.f32 %v750_v52, 0.0  ;;  %v870_v60 = vpop.xlane.xlu0 %869  ;;  %v1951_v10 = vmul.f32 0.0051020407, %v866_v55  ;;  %v611_v59 = vsub.f32 %v603_v46, %v607_v31 }
  0xe4   :  { %1400 = vrsqrt.f32 %v755_v54  ;;  %v1948_v3 = vmul.f32 0.0051020407, %v870_v60  ;;  %v610_v7 = vmul.f32 %v602_v57, %v1868_v20  ;;  %v753_v8 = vmax.f32 %v749_v1, 0.0  ;;  %v597_v20 = vld [vmem:[%s2548_s1 + $0x70] sm:$0xff] }
  0xe5   :  { %v758_v0 = vadd.f32 1e-05, %v754_v12  ;;  %477 = vperm.xlu1 %1365, %v443_v56   ;;  %632 = vperm.xlu0 %1364, %v602_v57   ;;  %v911_v24 = vmul.f32 %v1951_v10, %v1951_v10  ;;  %v601_v35 = vmul.f32 %v1397_v15, %v597_v20  ;;  %v931_v15 = vld [vmem:[%s2548_s1 + $0xa0] sm:$0xff] }
  0xe6   :  { %v878_v43 = vpop.xlane.xlu1 %877  ;;  %v912_v36 = vmul.f32 %v1948_v3, %v1948_v3  ;;  %v614_v23 = vsub.f32 %v606_v13, %v610_v7  ;;  %v757_v28 = vadd.f32 1e-05, %v753_v8 }
  0xe7   :  { %1402 = vrsqrt.f32 %v758_v0  ;;  %v874_v4 = vpop.xlane.xlu0 %873  ;;  %v1956_v11 = vmul.f32 0.0051020407, %v878_v43  ;;  %v609_v54 = vmul.f32 %v601_v35, %v1886_v39 }
  0xe8   :  { %v1965_v26 = vmul.f32 0.0051020407, %v874_v4  ;;  %1404 = vrsqrt.f32 %v757_v28  ;;  %v774_v4 = vld [vmem:[%s2549_s2 + $0x98] sm:$0xff] }
  0xe9   :  { %487 = vperm.xlu1 %1365, %v445_v2   ;;  %650 = vperm.xlu0 %1364, %v612_v51   ;;  %v914_v32 = vmul.f32 %v1956_v11, %v1956_v11  ;;  %v613_v43 = vsub.f32 %v605_v61, %v609_v54 }
  0xea   :  { %v894_v17 = vpop.xlane.xlu1 %893  ;;  %v913_v21 = vmul.f32 %v1965_v26, %v1965_v26 }
  0xeb   :  { %v908_v19 = vmul.f32 0.0051020407, %v894_v17  ;;  %v890_v22 = vpop.xlane.xlu0 %889  ;;  %v765_v17 = vld [vmem:[%s2548_s1 + $0x90] sm:$0xff] }
  0xec   :  { %v907_v25 = vmul.f32 0.0051020407, %v890_v22 }
  0xed   :  { %v1399_v41 = vpop.eup %1398  ;;  %v916_v29 = vsub.f32 %v908_v19, %v912_v36  ;;  %622 = vperm.xlu1 %1365, %v600_v48   ;;  %660 = vperm.xlu0 %1364, %v614_v23  }
  0xee   :  { %v1401_v30 = vpop.eup %1400  ;;  %v915_v6 = vsub.f32 %v907_v25, %v911_v24  ;;  %v902_v33 = vpop.xlane.xlu1 %901  ;;  %v768_v47 = vmul.f32 %v1399_v41, %v764_v5  ;;  %v771_v5 = vld [vmem:[%s2549_s2 + $0x80] sm:$0xff]  ;;  %v934_v41 = vld [vmem:[%s2548_s1 + $0xb8] sm:$0xff] }
  0xef   :  { %v920_v37 = vmax.f32 %v916_v29, 0.0  ;;  %v910_v40 = vmul.f32 0.0051020407, %v902_v33  ;;  %v898_v42 = vpop.xlane.xlu0 %897  ;;  %v767_v44 = vmul.f32 %v1401_v30, %v763_v27 }
  0xf0   :  { %v919_v48 = vmax.f32 %v915_v6, 0.0  ;;  %v909_v18 = vmul.f32 0.0051020407, %v898_v42  ;;  %v776_v12 = vmul.f32 %v768_v47, %v1904_v9 }
  0xf1   :  { %v1403_v49 = vpop.eup %1402  ;;  %v924_v38 = vadd.f32 1e-05, %v920_v37  ;;  %v918_v50 = vsub.f32 %v910_v40, %v914_v32  ;;  %627 = vperm.xlu1 %1365, %v601_v35   ;;  %785 = vperm.xlu0 %1364, %v767_v44   ;;  %v775_v22 = vmul.f32 %v767_v44, %v1907_v14  ;;  %v933_v14 = vld [vmem:[%s2548_s1 + $0xb0] sm:$0xff] }
  0xf2   :  { %v923_v52 = vadd.f32 1e-05, %v919_v48  ;;  %v917_v53 = vsub.f32 %v909_v18, %v913_v21  ;;  %v1034_v55 = vpop.xlane.xlu1 %1033  ;;  %v770_v56 = vmul.f32 %v1403_v49, %v766_v45  ;;  %v780_v2 = vsub.f32 %v772_v62, %v776_v12  ;;  %v1405_v7 = vpop.eup %1404  ;;  %v773_v45 = vld [vmem:[%s2549_s2 + $0x90] sm:$0xff] }
  0xf3   :  { %1406 = vrsqrt.f32 %v924_v38  ;;  %v922_v57 = vmax.f32 %v918_v50, 0.0  ;;  %v1038_v58 = vpop.xlane.xlu0 %1037  ;;  %v769_v20 = vmul.f32 %v1405_v7, %v765_v17  ;;  %v2016_v29 = vmul.f32 0.0051020407, %v1034_v55  ;;  %v941_v62 = vld [vmem:[%s2549_s2 + $0xb0] sm:$0xff] }
  0xf4   :  { %1408 = vrsqrt.f32 %v923_v52  ;;  %v921_v60 = vmax.f32 %v917_v53, 0.0  ;;  %v778_v9 = vmul.f32 %v770_v56, %v1912_v16  ;;  %v932_v16 = vld [vmem:[%s2548_s1 + $0xa8] sm:$0xff]  ;;  %v2006_v24 = vmul.f32 0.0051020407, %v1038_v58 }
  0xf5   :  { %v926_v63 = vadd.f32 1e-05, %v922_v57  ;;  %645 = vperm.xlu1 %1365, %v611_v59   ;;  %800 = vperm.xlu0 %1364, %v770_v56   ;;  %v779_v33 = vsub.f32 %v771_v5, %v775_v22  ;;  %v777_v37 = vmul.f32 %v769_v20, %v1930_v34  ;;  %v1079_v48 = vmul.f32 %v2016_v29, %v2016_v29  ;;  %v940_v34 = vld [vmem:[%s2549_s2 + $0xa8] sm:$0xff] }
  0xf6   :  { %v925_v39 = vadd.f32 1e-05, %v921_v60  ;;  %v1046_v0 = vpop.xlane.xlu1 %1045  ;;  %v782_v8 = vsub.f32 %v774_v4, %v778_v9  ;;  %v1080_v40 = vmul.f32 %v2006_v24, %v2006_v24 }
  0xf7   :  { %1410 = vrsqrt.f32 %v926_v63  ;;  %v1042_v1 = vpop.xlane.xlu0 %1041  ;;  %v2022_v32 = vmul.f32 0.0051020407, %v1046_v0  ;;  %v781_v53 = vsub.f32 %v773_v45, %v777_v37 }
  0xf8   :  { %1412 = vrsqrt.f32 %v925_v39  ;;  %v2035_v18 = vmul.f32 0.0051020407, %v1042_v1 }
  0xf9   :  { %655 = vperm.xlu1 %1365, %v613_v43   ;;  %818 = vperm.xlu0 %1364, %v780_v2   ;;  %v1082_v38 = vmul.f32 %v2022_v32, %v2022_v32 }
  0xfa   :  { %v1206_v51 = vpop.xlane.xlu1 %1205  ;;  %v1081_v59 = vmul.f32 %v2035_v18, %v2035_v18 }
  0xfb   :  { %v1202_v13 = vpop.xlane.xlu0 %1201  ;;  %v2043_v50 = vmul.f32 0.0051020407, %v1206_v51 }
  0xfc   :  { %v2048_v12 = vmul.f32 0.0051020407, %v1202_v13 }
  0xfd   :  { %v1407_v36 = vpop.eup %1406  ;;  %790 = vperm.xlu1 %1365, %v768_v47   ;;  %828 = vperm.xlu0 %1364, %v782_v8   ;;  %v1248_v0 = vmul.f32 %v2043_v50, %v2043_v50 }
  0xfe   :  { %v1409_v19 = vpop.eup %1408  ;;  %v1214_v23 = vpop.xlane.xlu1 %1213  ;;  %v936_v28 = vmul.f32 %v1407_v36, %v932_v16  ;;  %v1247_v13 = vmul.f32 %v2048_v12, %v2048_v12 }
  0xff   :  { %v1210_v25 = vpop.xlane.xlu0 %1209  ;;  %v2008_v27 = vmul.f32 %v1409_v19, %v931_v15  ;;  %v2055_v1 = vmul.f32 0.0051020407, %v1214_v23 }
 0x100   :  { %v944_v47 = vmul.f32 %v936_v28, %v1948_v3  ;;  %v2059_v8 = vmul.f32 0.0051020407, %v1210_v25 }
 0x101   :  { %v1411_v30 = vpop.eup %1410  ;;  %795 = vperm.xlu1 %1365, %v769_v20   ;;  %953 = vperm.xlu0 %1364, %v2008_v27   ;;  %v1250_v20 = vmul.f32 %v2055_v1, %v2055_v1  ;;  %v943_v25 = vmul.f32 %v2008_v27, %v1951_v10  ;;  %v1100_v10 = vld [vmem:[%s2548_s1 + $0xc8] sm:$0xff] }
 0x102   :  { %v1413_v31 = vpop.eup %1412  ;;  %v1062_v6 = vpop.xlane.xlu1 %1061  ;;  %v2024_v35 = vmul.f32 %v1411_v30, %v934_v41  ;;  %v948_v57 = vsub.f32 %v940_v34, %v944_v47  ;;  %v942_v47 = vld [vmem:[%s2549_s2 + $0xb8] sm:$0xff] }
 0x103   :  { %v1076_v42 = vmul.f32 0.0051020407, %v1062_v6  ;;  %v1058_v44 = vpop.xlane.xlu0 %1057  ;;  %v937_v21 = vmul.f32 %v1413_v31, %v933_v14  ;;  %v1249_v14 = vmul.f32 %v2059_v8, %v2059_v8  ;;  %v939_v6 = vld [vmem:[%s2549_s2 + $0xa0] sm:$0xff] }
 0x104   :  { %v1075_v46 = vmul.f32 0.0051020407, %v1058_v44  ;;  %v946_v44 = vmul.f32 %v2024_v35, %v1956_v11  ;;  %v1102_v11 = vld [vmem:[%s2548_s1 + $0xd8] sm:$0xff] }
 0x105   :  { %v1084_v49 = vsub.f32 %v1076_v42, %v1080_v40  ;;  %813 = vperm.xlu1 %1365, %v779_v33   ;;  %968 = vperm.xlu0 %1364, %v2024_v35   ;;  %v945_v58 = vmul.f32 %v937_v21, %v1965_v26  ;;  %v947_v42 = vsub.f32 %v939_v6, %v943_v25  ;;  %v1278_v25 = vld [vmem:[%s2549_s2 + $0xf8] sm:$0xff] }
 0x106   :  { %v1083_v3 = vsub.f32 %v1075_v46, %v1079_v48  ;;  %v1070_v52 = vpop.xlane.xlu1 %1069 }
 0x107   :  { %v1088_v54 = vmax.f32 %v1084_v49, 0.0  ;;  %v1078_v55 = vmul.f32 0.0051020407, %v1070_v52  ;;  %v1066_v56 = vpop.xlane.xlu0 %1065  ;;  %v949_v7 = vsub.f32 %v941_v62, %v945_v58  ;;  %v950_v49 = vsub.f32 %v942_v47, %v946_v44  ;;  %v1101_v58 = vld [vmem:[%s2548_s1 + $0xd0] sm:$0xff] }
 0x108   :  { %v1087_v60 = vmax.f32 %v1083_v3, 0.0  ;;  %v1077_v61 = vmul.f32 0.0051020407, %v1066_v56  ;;  %v1108_v56 = vld [vmem:[%s2549_s2 + $0xc8] sm:$0xff] }
 0x109   :  { %v1092_v63 = vadd.f32 1e-05, %v1088_v54  ;;  %v1086_v39 = vsub.f32 %v1078_v55, %v1082_v38  ;;  %823 = vperm.xlu1 %1365, %v781_v53   ;;  %986 = vperm.xlu0 %1364, %v948_v57   ;;  %v1099_v38 = vld [vmem:[%s2548_s1 + $0xc0] sm:$0xff] }
 0x10a   :  { %v1091_v26 = vadd.f32 1e-05, %v1087_v60  ;;  %v1085_v43 = vsub.f32 %v1077_v61, %v1081_v59  ;;  %v1230_v2 = vpop.xlane.xlu1 %1229 }
 0x10b   :  { %1414 = vrsqrt.f32 %v1092_v63  ;;  %v1090_v9 = vmax.f32 %v1086_v39, 0.0  ;;  %v1244_v4 = vmul.f32 0.0051020407, %v1230_v2  ;;  %v1226_v51 = vpop.xlane.xlu0 %1225  ;;  %v1107_v63 = vld [vmem:[%s2549_s2 + $0xc0] sm:$0xff] }
 0x10c   :  { %v1089_v17 = vmax.f32 %v1085_v43, 0.0  ;;  %v1243_v15 = vmul.f32 0.0051020407, %v1226_v51  ;;  %1416 = vrsqrt.f32 %v1091_v26 }
 0x10d   :  { %v1094_v16 = vadd.f32 1e-05, %v1090_v9  ;;  %v1252_v36 = vsub.f32 %v1244_v4, %v1248_v0  ;;  %958 = vperm.xlu1 %1365, %v936_v28   ;;  %991 = vperm.xlu0 %1364, %v949_v7   ;;  %v1268_v9 = vld [vmem:[%s2548_s1 + $0xe8] sm:$0xff]  ;;  %v1109_v4 = vld [vmem:[%s2549_s2 + $0xd0] sm:$0xff] }
 0x10e   :  { %v1093_v19 = vadd.f32 1e-05, %v1089_v17  ;;  %v1251_v22 = vsub.f32 %v1243_v15, %v1247_v13  ;;  %v1238_v23 = vpop.xlane.xlu1 %1237  ;;  %v1110_v15 = vld [vmem:[%s2549_s2 + $0xd8] sm:$0xff] }
 0x10f   :  { %1418 = vrsqrt.f32 %v1094_v16  ;;  %v1246_v5 = vmul.f32 0.0051020407, %v1238_v23  ;;  %v1234_v41 = vpop.xlane.xlu0 %1233  ;;  %v1256_v30 = vmax.f32 %v1252_v36, 0.0  ;;  %v1270_v16 = vld [vmem:[%s2548_s1 + $0xf8] sm:$0xff] }
 0x110   :  { %v1255_v31 = vmax.f32 %v1251_v22, 0.0  ;;  %v1245_v28 = vmul.f32 0.0051020407, %v1234_v41  ;;  %1420 = vrsqrt.f32 %v1093_v19 }
 0x111   :  { %v1254_v33 = vsub.f32 %v1246_v5, %v1250_v20  ;;  %963 = vperm.xlu1 %1365, %v937_v21   ;;  %v1260_v27 = vadd.f32 1e-05, %v1256_v30 }
 0x112   :  { %v1259_v37 = vadd.f32 1e-05, %v1255_v31  ;;  %v1253_v40 = vsub.f32 %v1245_v28, %v1249_v14 }
 0x113   :  { %v1258_v21 = vmax.f32 %v1254_v33, 0.0 }
 0x114   :  { %v1257_v45 = vmax.f32 %v1253_v40, 0.0  ;;  %1422 = vrsqrt.f32 %v1259_v37  ;;  %v1430_v37 = vld [vmem:[%s2547_s0] sm:$0xff] }
 0x115   :  { %v1415_v48 = vpop.eup %1414  ;;  %981 = vperm.xlu1 %1365, %v947_v42   ;;  %1424 = vrsqrt.f32 %v1260_v27  ;;  %v1262_v52 = vadd.f32 1e-05, %v1258_v21 }
 0x116   :  { %v1261_v46 = vadd.f32 1e-05, %v1257_v45  ;;  %v1104_v34 = vmul.f32 %v1415_v48, %v1100_v10  ;;  %v1417_v35 = vpop.eup %1416  ;;  %v1432_v45 = vld [vmem:[%s2547_s0 + $0x10] sm:$0xff]  ;;  %v1433_v48 = vld [vmem:[%s2547_s0 + $0x18] sm:$0xff] }
 0x117   :  { %v1103_v55 = vmul.f32 %v1417_v35, %v1099_v38 }
 0x118   :  { %1126 = vperm.xlu0 %1364, %v1104_v34   ;;  %1426 = vrsqrt.f32 %v1261_v46  ;;  %v1112_v54 = vmul.f32 %v1104_v34, %v2006_v24  ;;  %v1267_v24 = vld [vmem:[%s2548_s1 + $0xe0] sm:$0xff] }
 0x119   :  { %v1419_v3 = vpop.eup %1418  ;;  %996 = vperm.xlu1 %1365, %v950_v49   ;;  %1428 = vrsqrt.f32 %v1262_v52  ;;  %v1111_v62 = vmul.f32 %v1103_v55, %v2016_v29  ;;  %v1269_v29 = vld [vmem:[%s2548_s1 + $0xf0] sm:$0xff] }
 0x11a   :  { %v1106_v53 = vmul.f32 %v1419_v3, %v1102_v11  ;;  %v1421_v57 = vpop.eup %1420  ;;  %v1116_v59 = vsub.f32 %v1108_v56, %v1112_v54  ;;  %v1434_v3 = vld [vmem:[%s2547_s0 + $0x20] sm:$0xff] }
 0x11b   :  { %v1105_v61 = vmul.f32 %v1421_v57, %v1101_v58  ;;  %v1115_v43 = vsub.f32 %v1107_v63, %v1111_v62 }
 0x11c   :  { %1136 = vperm.xlu0 %1364, %v1106_v53   ;;  %v1114_v13 = vmul.f32 %v1106_v53, %v2022_v32  ;;  %v1276_v32 = vld [vmem:[%s2549_s2 + $0xe8] sm:$0xff] }
 0x11d   :  { %1121 = vperm.xlu1 %1365, %v1103_v55   ;;  %v1113_v2 = vmul.f32 %v1105_v61, %v2035_v18  ;;  %v1435_v53 = vld [vmem:[%s2547_s0 + $0x28] sm:$0xff] }
 0x11e   :  { %v1423_v60 = vpop.eup %1422  ;;  %v1118_v36 = vsub.f32 %v1110_v15, %v1114_v13 }
 0x11f   :  { %v1425_v39 = vpop.eup %1424  ;;  %v1271_v0 = vmul.f32 %v1423_v60, %v1267_v24  ;;  %v1117_v18 = vsub.f32 %v1109_v4, %v1113_v2  ;;  %v1437_v24 = vld [vmem:[%s2547_s0 + $0x38] sm:$0xff] }
 0x120   :  { %1154 = vperm.xlu0 %1364, %v1116_v59   ;;  %v1272_v7 = vmul.f32 %v1425_v39, %v1268_v9  ;;  %v1438_v9 = vld [vmem:[%s2547_s0 + $0x70] sm:$0xff] }
 0x121   :  { %1131 = vperm.xlu1 %1365, %v1105_v61   ;;  %v1279_v41 = vmul.f32 %v1271_v0, %v2048_v12  ;;  %v1277_v12 = vld [vmem:[%s2549_s2 + $0xf0] sm:$0xff] }
 0x122   :  { %v1427_v26 = vpop.eup %1426  ;;  %v1280_v22 = vmul.f32 %v1272_v7, %v2043_v50  ;;  %v1275_v50 = vld [vmem:[%s2549_s2 + $0xe0] sm:$0xff]  ;;  %v1436_v61 = vld [vmem:[%s2547_s0 + $0x30] sm:$0xff] }
 0x123   :  { %v1273_v51 = vmul.f32 %v1427_v26, %v1269_v29  ;;  %v1429_v17 = vpop.eup %1428  ;;  %v1283_v30 = vsub.f32 %v1275_v50, %v1279_v41 }
 0x124   :  { %1289 = vperm.xlu0 %1364, %v1271_v0   ;;  %v1274_v19 = vmul.f32 %v1429_v17, %v1270_v16  ;;  %v1284_v23 = vsub.f32 %v1276_v32, %v1280_v22  ;;  %v1440_v16 = vld [vmem:[%s2547_s0 + $0x50] sm:$0xff] }
 0x125   :  { %1149 = vperm.xlu1 %1365, %v1115_v43   ;;  %v1281_v31 = vmul.f32 %v1273_v51, %v2059_v8  ;;  %v1431_v8 = vld [vmem:[%s2547_s0 + $0x8] sm:$0xff] }
 0x126   :  { %v1282_v20 = vmul.f32 %v1274_v19, %v2055_v1 }
 0x127   :  { %v1285_v1 = vsub.f32 %v1277_v12, %v1281_v31 }
 0x128   :  { %1299 = vperm.xlu0 %1364, %v1273_v51   ;;  %v1286_v14 = vsub.f32 %v1278_v25, %v1282_v20  ;;  %v1439_v51 = vld [vmem:[%s2547_s0 + $0x78] sm:$0xff] }
 0x129   :  { %1159 = vperm.xlu1 %1365, %v1117_v18  }
 0x12c   :  { %1164 = vperm.xlu0 %1364, %v1118_v36  }
 0x12d   :  { %1294 = vperm.xlu1 %1365, %v1272_v7  }
 0x12f   :  { %v119_v5 = vpop.permute.xlu1 %118 }
 0x130   :  { %1322 = vperm.xlu0 %1364, %v1284_v23   ;;  %v114_v6 = vpop.permute.xlu0 %113  ;;  %v133_v47 = vmul.f32 %v1432_v45, %v119_v5  ;;  %v134_v21 = vmul.f32 %v1433_v48, %v119_v5 }
 0x131   :  { %1304 = vperm.xlu1 %1365, %v1274_v19   ;;  %v131_v40 = vmul.f32 %v1430_v37, %v114_v6  ;;  %v132_v42 = vmul.f32 %v1431_v8, %v114_v6  ;;  %v1441_v19 = vld [vmem:[%s2547_s0 + $0x58] sm:$0xff] }
 0x134   :  { %v124_v28 = vpop.permute.xlu1 %123  ;;  %1332 = vperm.xlu0 %1364, %v1286_v14  }
 0x135   :  { %1317 = vperm.xlu1 %1365, %v1283_v30   ;;  %v135_v52 = vmul.f32 %v1434_v3, %v124_v28  ;;  %v136_v54 = vmul.f32 %v1435_v53, %v124_v28  ;;  %v1442_v28 = vld [vmem:[%s2547_s0 + $0x40] sm:$0xff] }
 0x138   :  { %v129_v33 = vpop.permute.xlu1 %128 }
 0x139   :  { %1327 = vperm.xlu1 %1365, %v1285_v1   ;;  %v137_v62 = vmul.f32 %v1436_v61, %v129_v33  ;;  %v138_v63 = vmul.f32 %v1437_v24, %v129_v33  ;;  %v1443_v1 = vld [vmem:[%s2547_s0 + $0x48] sm:$0xff] }
 0x13c   :  { %v142_v44 = vpop.permute.xlu1 %141 }
 0x13d   :  { %v159_v10 = vadd.f32 %v142_v44, %v131_v40  ;;  %v160_v27 = vadd.f32 %v142_v44, %v132_v42  ;;  %v1444_v42 = vld [vmem:[%s2547_s0 + $0x60] sm:$0xff] }
 0x13f   :  { %v167_v46 = vmax.f32 %v159_v10, 0.0  ;;  %v168_v34 = vmax.f32 %v160_v27, 0.0  ;;  %v1445_v10 = vld [vmem:[%s2547_s0 + $0x68] sm:$0xff] }
 0x140   :  { %v147_v49 = vpop.permute.xlu1 %146  ;;  %v282_v11 = vpop.permute.xlu0 %281 }
 0x141   :  { %175 = vst [vmem:[%s2550_s3] sm:$0xff] %v167_v46  ;;  %176 = vst.msk [vmem:[%s2550_s3 + $0x8] sm:$0xff] %vm22_vm0, %v168_v34  ;;  %v161_v35 = vadd.f32 %v147_v49, %v133_v47  ;;  %v162_v38 = vadd.f32 %v147_v49, %v134_v21  ;;  %v299_v12 = vmul.f32 %v1442_v28, %v282_v11  ;;  %v1446_v49 = vld [vmem:[%s2547_s0 + $0xb0] sm:$0xff] }
 0x142   :  { %v300_v6 = vmul.f32 %v1443_v1, %v282_v11  ;;  %v1456_v1 = vld [vmem:[%s2547_s0 + $0xd0] sm:$0xff] }
 0x143   :  { %v169_v55 = vmax.f32 %v161_v35, 0.0  ;;  %v170_v56 = vmax.f32 %v162_v38, 0.0  ;;  %v1447_v35 = vld [vmem:[%s2547_s0 + $0xb8] sm:$0xff] }
 0x144   :  { %v152_v57 = vpop.permute.xlu1 %151  ;;  %v297_v58 = vpop.permute.xlu0 %296 }
 0x145   :  { %177 = vst [vmem:[%s2550_s3 + $0x10] sm:$0xff] %v169_v55  ;;  %178 = vst.msk [vmem:[%s2550_s3 + $0x18] sm:$0xff] %vm22_vm0, %v170_v56  ;;  %v163_v59 = vadd.f32 %v152_v57, %v135_v52  ;;  %v164_v60 = vadd.f32 %v152_v57, %v136_v54  ;;  %v305_v4 = vmul.f32 %v1438_v9, %v297_v58  ;;  %v1448_v55 = vld [vmem:[%s2547_s0 + $0x90] sm:$0xff]  ;;  %v1449_v57 = vld [vmem:[%s2547_s0 + $0x98] sm:$0xff] }
 0x146   :  { %v306_v7 = vmul.f32 %v1439_v51, %v297_v58  ;;  %v1451_v9 = vld [vmem:[%s2547_s0 + $0x88] sm:$0xff] }
 0x147   :  { %v171_v39 = vmax.f32 %v163_v59, 0.0  ;;  %v172_v0 = vmax.f32 %v164_v60, 0.0 }
 0x148   :  { %v157_v26 = vpop.permute.xlu1 %156  ;;  %v315_v43 = vpop.permute.xlu0 %314 }
 0x149   :  { %179 = vst [vmem:[%s2550_s3 + $0x20] sm:$0xff] %v171_v39  ;;  %180 = vst.msk [vmem:[%s2550_s3 + $0x28] sm:$0xff] %vm22_vm0, %v172_v0  ;;  %v165_v2 = vadd.f32 %v157_v26, %v137_v62  ;;  %v166_v29 = vadd.f32 %v157_v26, %v138_v63 }
 0x14b   :  { %v173_v13 = vmax.f32 %v165_v2, 0.0  ;;  %v174_v17 = vmax.f32 %v166_v29, 0.0  ;;  %v1450_v2 = vld [vmem:[%s2547_s0 + $0x80] sm:$0xff] }
 0x14c   :  { %v287_v18 = vpop.permute.xlu1 %286  ;;  %v325_v15 = vpop.permute.xlu0 %324 }
 0x14d   :  { %181 = vst [vmem:[%s2550_s3 + $0x30] sm:$0xff] %v173_v13  ;;  %182 = vst.msk [vmem:[%s2550_s3 + $0x38] sm:$0xff] %vm22_vm0, %v174_v17  ;;  %v301_v36 = vmul.f32 %v1440_v16, %v287_v18  ;;  %v302_v22 = vmul.f32 %v1441_v19, %v287_v18  ;;  %v333_v32 = vadd.f32 %v325_v15, %v305_v4  ;;  %v1452_v18 = vld [vmem:[%s2547_s0 + $0xa0] sm:$0xff]  ;;  %v1453_v16 = vld [vmem:[%s2547_s0 + $0xa8] sm:$0xff] }
 0x14e   :  { %v334_v23 = vadd.f32 %v325_v15, %v306_v7 }
 0x14f   :  { %v329_v20 = vadd.f32 %v315_v43, %v301_v36  ;;  %v330_v5 = vadd.f32 %v315_v43, %v302_v22  ;;  %v341_v41 = vmax.f32 %v333_v32, 0.0 }
 0x150   :  { %v342_v25 = vmax.f32 %v334_v23, 0.0  ;;  %v292_v50 = vpop.permute.xlu1 %291  ;;  %v450_v14 = vpop.permute.xlu0 %449 }
 0x151   :  { %v337_v30 = vmax.f32 %v329_v20, 0.0  ;;  %v338_v31 = vmax.f32 %v330_v5, 0.0  ;;  %349 = vst [vmem:[%s2550_s3 + $0x70] sm:$0xff] %v341_v41  ;;  %v303_v44 = vmul.f32 %v1444_v42, %v292_v50  ;;  %v304_v27 = vmul.f32 %v1445_v10, %v292_v50  ;;  %v1454_v41 = vld [vmem:[%s2547_s0 + $0xf0] sm:$0xff]  ;;  %v1455_v50 = vld [vmem:[%s2547_s0 + $0xf8] sm:$0xff] }
 0x152   :  { %350 = vst.msk [vmem:[%s2550_s3 + $0x78] sm:$0xff] %vm22_vm0, %v342_v25  ;;  %v467_v29 = vmul.f32 %v1450_v2, %v450_v14  ;;  %v468_v4 = vmul.f32 %v1451_v9, %v450_v14  ;;  %v1464_v9 = vld [vmem:[%s2547_s0 + $0x110] sm:$0xff] }
 0x153   :  { %345 = vst [vmem:[%s2550_s3 + $0x50] sm:$0xff] %v337_v30  ;;  %346 = vst.msk [vmem:[%s2550_s3 + $0x58] sm:$0xff] %vm22_vm0, %v338_v31 }
 0x154   :  { %v310_v33 = vpop.permute.xlu1 %309  ;;  %v465_v37 = vpop.permute.xlu0 %464 }
 0x155   :  { %v327_v40 = vadd.f32 %v310_v33, %v299_v12  ;;  %v328_v8 = vadd.f32 %v310_v33, %v300_v6  ;;  %v473_v11 = vmul.f32 %v1446_v49, %v465_v37  ;;  %v474_v38 = vmul.f32 %v1447_v35, %v465_v37  ;;  %v1457_v33 = vld [vmem:[%s2547_s0 + $0xd8] sm:$0xff]  ;;  %v1459_v49 = vld [vmem:[%s2547_s0 + $0xc8] sm:$0xff] }
 0x157   :  { %v335_v45 = vmax.f32 %v327_v40, 0.0  ;;  %v336_v47 = vmax.f32 %v328_v8, 0.0 }
 0x158   :  { %v320_v48 = vpop.permute.xlu1 %319  ;;  %v483_v21 = vpop.permute.xlu0 %482 }
 0x159   :  { %343 = vst [vmem:[%s2550_s3 + $0x40] sm:$0xff] %v335_v45  ;;  %344 = vst.msk [vmem:[%s2550_s3 + $0x48] sm:$0xff] %vm22_vm0, %v336_v47  ;;  %v331_v46 = vadd.f32 %v320_v48, %v303_v44  ;;  %v332_v34 = vadd.f32 %v320_v48, %v304_v27 }
 0x15b   :  { %v339_v3 = vmax.f32 %v331_v46, 0.0  ;;  %v340_v52 = vmax.f32 %v332_v34, 0.0  ;;  %v1458_v46 = vld [vmem:[%s2547_s0 + $0xc0] sm:$0xff] }
 0x15c   :  { %v455_v53 = vpop.permute.xlu1 %454  ;;  %v493_v54 = vpop.permute.xlu0 %492 }
 0x15d   :  { %347 = vst [vmem:[%s2550_s3 + $0x60] sm:$0xff] %v339_v3  ;;  %348 = vst.msk [vmem:[%s2550_s3 + $0x68] sm:$0xff] %vm22_vm0, %v340_v52  ;;  %v469_v56 = vmul.f32 %v1448_v55, %v455_v53  ;;  %v470_v58 = vmul.f32 %v1449_v57, %v455_v53  ;;  %v501_v59 = vadd.f32 %v493_v54, %v473_v11  ;;  %v1460_v53 = vld [vmem:[%s2547_s0 + $0xe0] sm:$0xff]  ;;  %v1461_v55 = vld [vmem:[%s2547_s0 + $0xe8] sm:$0xff] }
 0x15e   :  { %v502_v60 = vadd.f32 %v493_v54, %v474_v38 }
 0x15f   :  { %v497_v61 = vadd.f32 %v483_v21, %v469_v56  ;;  %v498_v62 = vadd.f32 %v483_v21, %v470_v58  ;;  %v509_v24 = vmax.f32 %v501_v59, 0.0 }
 0x160   :  { %v510_v63 = vmax.f32 %v502_v60, 0.0  ;;  %v460_v39 = vpop.permute.xlu1 %459  ;;  %v618_v0 = vpop.permute.xlu0 %617 }
 0x161   :  { %v505_v26 = vmax.f32 %v497_v61, 0.0  ;;  %v506_v43 = vmax.f32 %v498_v62, 0.0  ;;  %517 = vst [vmem:[%s2550_s3 + $0xb0] sm:$0xff] %v509_v24  ;;  %v471_v15 = vmul.f32 %v1452_v18, %v460_v39  ;;  %v472_v36 = vmul.f32 %v1453_v16, %v460_v39  ;;  %v1462_v24 = vld [vmem:[%s2547_s0 + $0x130] sm:$0xff]  ;;  %v1463_v39 = vld [vmem:[%s2547_s0 + $0x138] sm:$0xff] }
 0x162   :  { %518 = vst.msk [vmem:[%s2550_s3 + $0xb8] sm:$0xff] %vm22_vm0, %v510_v63  ;;  %v635_v34 = vmul.f32 %v1458_v46, %v618_v0  ;;  %v636_v11 = vmul.f32 %v1459_v49, %v618_v0 }
 0x163   :  { %513 = vst [vmem:[%s2550_s3 + $0x90] sm:$0xff] %v505_v26  ;;  %514 = vst.msk [vmem:[%s2550_s3 + $0x98] sm:$0xff] %vm22_vm0, %v506_v43 }
 0x164   :  { %v478_v51 = vpop.permute.xlu1 %477  ;;  %v633_v7 = vpop.permute.xlu0 %632 }
 0x165   :  { %v495_v13 = vadd.f32 %v478_v51, %v467_v29  ;;  %v496_v17 = vadd.f32 %v478_v51, %v468_v4  ;;  %v641_v25 = vmul.f32 %v1454_v41, %v633_v7  ;;  %v642_v14 = vmul.f32 %v1455_v50, %v633_v7  ;;  %v1465_v51 = vld [vmem:[%s2547_s0 + $0x118] sm:$0xff]  ;;  %v1467_v41 = vld [vmem:[%s2547_s0 + $0x108] sm:$0xff] }
 0x167   :  { %v503_v19 = vmax.f32 %v495_v13, 0.0  ;;  %v504_v22 = vmax.f32 %v496_v17, 0.0 }
 0x168   :  { %v488_v32 = vpop.permute.xlu1 %487  ;;  %v651_v23 = vpop.permute.xlu0 %650 }
 0x169   :  { %511 = vst [vmem:[%s2550_s3 + $0x80] sm:$0xff] %v503_v19  ;;  %512 = vst.msk [vmem:[%s2550_s3 + $0x88] sm:$0xff] %vm22_vm0, %v504_v22  ;;  %v499_v20 = vadd.f32 %v488_v32, %v471_v15  ;;  %v500_v5 = vadd.f32 %v488_v32, %v472_v36 }
 0x16b   :  { %v507_v30 = vmax.f32 %v499_v20, 0.0  ;;  %v508_v31 = vmax.f32 %v500_v5, 0.0  ;;  %v1466_v20 = vld [vmem:[%s2547_s0 + $0x100] sm:$0xff] }
 0x16c   :  { %v623_v28 = vpop.permute.xlu1 %622  ;;  %v661_v12 = vpop.permute.xlu0 %660 }
 0x16d   :  { %515 = vst [vmem:[%s2550_s3 + $0xa0] sm:$0xff] %v507_v30  ;;  %516 = vst.msk [vmem:[%s2550_s3 + $0xa8] sm:$0xff] %vm22_vm0, %v508_v31  ;;  %v637_v6 = vmul.f32 %v1456_v1, %v623_v28  ;;  %v638_v37 = vmul.f32 %v1457_v33, %v623_v28  ;;  %v669_v40 = vadd.f32 %v661_v12, %v641_v25  ;;  %v1468_v28 = vld [vmem:[%s2547_s0 + $0x120] sm:$0xff]  ;;  %v1469_v1 = vld [vmem:[%s2547_s0 + $0x128] sm:$0xff] }
 0x16e   :  { %v670_v8 = vadd.f32 %v661_v12, %v642_v14 }
 0x16f   :  { %v665_v42 = vadd.f32 %v651_v23, %v637_v6  ;;  %v666_v44 = vadd.f32 %v651_v23, %v638_v37  ;;  %v677_v10 = vmax.f32 %v669_v40, 0.0 }
 0x170   :  { %v678_v27 = vmax.f32 %v670_v8, 0.0  ;;  %v628_v45 = vpop.permute.xlu1 %627  ;;  %v786_v47 = vpop.permute.xlu0 %785 }
 0x171   :  { %v673_v48 = vmax.f32 %v665_v42, 0.0  ;;  %v674_v21 = vmax.f32 %v666_v44, 0.0  ;;  %685 = vst [vmem:[%s2550_s3 + $0xf0] sm:$0xff] %v677_v10  ;;  %v639_v54 = vmul.f32 %v1460_v53, %v628_v45  ;;  %v640_v56 = vmul.f32 %v1461_v55, %v628_v45  ;;  %v1473_v53 = vld [vmem:[%s2547_s0 + $0x168] sm:$0xff] }
 0x172   :  { %686 = vst.msk [vmem:[%s2550_s3 + $0xf8] sm:$0xff] %vm22_vm0, %v678_v27  ;;  %v803_v5 = vmul.f32 %v1466_v20, %v786_v47  ;;  %v804_v25 = vmul.f32 %v1467_v41, %v786_v47  ;;  %v1470_v47 = vld [vmem:[%s2547_s0 + $0x150] sm:$0xff] }
 0x173   :  { %681 = vst [vmem:[%s2550_s3 + $0xd0] sm:$0xff] %v673_v48  ;;  %682 = vst.msk [vmem:[%s2550_s3 + $0xd8] sm:$0xff] %vm22_vm0, %v674_v21  ;;  %v1471_v21 = vld [vmem:[%s2547_s0 + $0x158] sm:$0xff] }
 0x174   :  { %v646_v35 = vpop.permute.xlu1 %645  ;;  %v801_v38 = vpop.permute.xlu0 %800 }
 0x175   :  { %v663_v3 = vadd.f32 %v646_v35, %v635_v34  ;;  %v664_v52 = vadd.f32 %v646_v35, %v636_v11  ;;  %v809_v63 = vmul.f32 %v1462_v24, %v801_v38  ;;  %v810_v0 = vmul.f32 %v1463_v39, %v801_v38 }
 0x177   :  { %v671_v57 = vmax.f32 %v663_v3, 0.0  ;;  %v672_v58 = vmax.f32 %v664_v52, 0.0  ;;  %v1472_v3 = vld [vmem:[%s2547_s0 + $0x160] sm:$0xff] }
 0x178   :  { %v656_v59 = vpop.permute.xlu1 %655  ;;  %v819_v60 = vpop.permute.xlu0 %818 }
 0x179   :  { %679 = vst [vmem:[%s2550_s3 + $0xc0] sm:$0xff] %v671_v57  ;;  %680 = vst.msk [vmem:[%s2550_s3 + $0xc8] sm:$0xff] %vm22_vm0, %v672_v58  ;;  %v667_v61 = vadd.f32 %v656_v59, %v639_v54  ;;  %v668_v62 = vadd.f32 %v656_v59, %v640_v56  ;;  %v1474_v56 = vld [vmem:[%s2547_s0 + $0x140] sm:$0xff]  ;;  %v1475_v58 = vld [vmem:[%s2547_s0 + $0x148] sm:$0xff] }
 0x17b   :  { %v675_v26 = vmax.f32 %v667_v61, 0.0  ;;  %v676_v43 = vmax.f32 %v668_v62, 0.0 }
 0x17c   :  { %v791_v2 = vpop.permute.xlu1 %790  ;;  %v829_v29 = vpop.permute.xlu0 %828 }
 0x17d   :  { %683 = vst [vmem:[%s2550_s3 + $0xe0] sm:$0xff] %v675_v26  ;;  %684 = vst.msk [vmem:[%s2550_s3 + $0xe8] sm:$0xff] %vm22_vm0, %v676_v43  ;;  %v805_v4 = vmul.f32 %v1464_v9, %v791_v2  ;;  %v806_v7 = vmul.f32 %v1465_v51, %v791_v2  ;;  %v837_v13 = vadd.f32 %v829_v29, %v809_v63  ;;  %v1476_v26 = vld [vmem:[%s2547_s0 + $0x170] sm:$0xff]  ;;  %v1477_v2 = vld [vmem:[%s2547_s0 + $0x178] sm:$0xff] }
 0x17e   :  { %v838_v17 = vadd.f32 %v829_v29, %v810_v0 }
 0x17f   :  { %v833_v18 = vadd.f32 %v819_v60, %v805_v4  ;;  %v834_v15 = vadd.f32 %v819_v60, %v806_v7  ;;  %v845_v16 = vmax.f32 %v837_v13, 0.0 }
 0x180   :  { %v846_v36 = vmax.f32 %v838_v17, 0.0  ;;  %v796_v19 = vpop.permute.xlu1 %795  ;;  %v954_v22 = vpop.permute.xlu0 %953 }
 0x181   :  { %v841_v32 = vmax.f32 %v833_v18, 0.0  ;;  %v842_v23 = vmax.f32 %v834_v15, 0.0  ;;  %853 = vst [vmem:[%s2550_s3 + $0x130] sm:$0xff] %v845_v16  ;;  %v807_v12 = vmul.f32 %v1468_v28, %v796_v19  ;;  %v808_v6 = vmul.f32 %v1469_v1, %v796_v19  ;;  %v1478_v19 = vld [vmem:[%s2547_s0 + $0x190] sm:$0xff]  ;;  %v1481_v28 = vld [vmem:[%s2547_s0 + $0x188] sm:$0xff] }
 0x182   :  { %854 = vst.msk [vmem:[%s2550_s3 + $0x138] sm:$0xff] %vm22_vm0, %v846_v36  ;;  %v971_v57 = vmul.f32 %v1474_v56, %v954_v22  ;;  %v972_v59 = vmul.f32 %v1475_v58, %v954_v22 }
 0x183   :  { %849 = vst [vmem:[%s2550_s3 + $0x110] sm:$0xff] %v841_v32  ;;  %850 = vst.msk [vmem:[%s2550_s3 + $0x118] sm:$0xff] %vm22_vm0, %v842_v23  ;;  %v1479_v32 = vld [vmem:[%s2547_s0 + $0x198] sm:$0xff] }
 0x184   :  { %v814_v50 = vpop.permute.xlu1 %813  ;;  %v969_v31 = vpop.permute.xlu0 %968 }
 0x185   :  { %v831_v14 = vadd.f32 %v814_v50, %v803_v5  ;;  %v832_v30 = vadd.f32 %v814_v50, %v804_v25  ;;  %v977_v43 = vmul.f32 %v1476_v26, %v969_v31  ;;  %v978_v29 = vmul.f32 %v1477_v2, %v969_v31  ;;  %v1489_v26 = vld [vmem:[%s2547_s0 + $0x1f8] sm:$0xff] }
 0x187   :  { %v839_v33 = vmax.f32 %v831_v14, 0.0  ;;  %v840_v37 = vmax.f32 %v832_v30, 0.0  ;;  %v1480_v30 = vld [vmem:[%s2547_s0 + $0x180] sm:$0xff] }
 0x188   :  { %v824_v40 = vpop.permute.xlu1 %823  ;;  %v987_v27 = vpop.permute.xlu0 %986 }
 0x189   :  { %847 = vst [vmem:[%s2550_s3 + $0x100] sm:$0xff] %v839_v33  ;;  %848 = vst.msk [vmem:[%s2550_s3 + $0x108] sm:$0xff] %vm22_vm0, %v840_v37  ;;  %v835_v8 = vadd.f32 %v824_v40, %v807_v12  ;;  %v836_v42 = vadd.f32 %v824_v40, %v808_v6  ;;  %v1482_v40 = vld [vmem:[%s2547_s0 + $0x1a0] sm:$0xff] }
 0x18b   :  { %v843_v44 = vmax.f32 %v835_v8, 0.0  ;;  %v844_v10 = vmax.f32 %v836_v42, 0.0  ;;  %v1483_v42 = vld [vmem:[%s2547_s0 + $0x1a8] sm:$0xff] }
 0x18c   :  { %v959_v45 = vpop.permute.xlu1 %958  ;;  %v992_v55 = vpop.permute.xlu0 %991 }
 0x18d   :  { %851 = vst [vmem:[%s2550_s3 + $0x120] sm:$0xff] %v843_v44  ;;  %852 = vst.msk [vmem:[%s2550_s3 + $0x128] sm:$0xff] %vm22_vm0, %v844_v10  ;;  %v973_v48 = vmul.f32 %v1470_v47, %v959_v45  ;;  %v974_v46 = vmul.f32 %v1471_v21, %v959_v45 }
 0x18f   :  { %v1001_v34 = vadd.f32 %v987_v27, %v973_v48  ;;  %v1002_v49 = vadd.f32 %v987_v27, %v974_v46  ;;  %v1484_v46 = vld [vmem:[%s2547_s0 + $0x1b0] sm:$0xff] }
 0x190   :  { %v964_v11 = vpop.permute.xlu1 %963 }
 0x191   :  { %v1009_v35 = vmax.f32 %v1001_v34, 0.0  ;;  %v1010_v38 = vmax.f32 %v1002_v49, 0.0  ;;  %v975_v52 = vmul.f32 %v1472_v3, %v964_v11  ;;  %v976_v54 = vmul.f32 %v1473_v53, %v964_v11  ;;  %v1485_v49 = vld [vmem:[%s2547_s0 + $0x1b8] sm:$0xff] }
 0x193   :  { %1017 = vst [vmem:[%s2550_s3 + $0x150] sm:$0xff] %v1009_v35  ;;  %1018 = vst.msk [vmem:[%s2550_s3 + $0x158] sm:$0xff] %vm22_vm0, %v1010_v38  ;;  %v1003_v60 = vadd.f32 %v992_v55, %v975_v52  ;;  %v1004_v61 = vadd.f32 %v992_v55, %v976_v54  ;;  %v1486_v55 = vld [vmem:[%s2547_s0 + $0x1d0] sm:$0xff] }
 0x194   :  { %v982_v62 = vpop.permute.xlu1 %981 }
 0x195   :  { %v1011_v24 = vmax.f32 %v1003_v60, 0.0  ;;  %v1012_v63 = vmax.f32 %v1004_v61, 0.0  ;;  %v999_v39 = vadd.f32 %v982_v62, %v971_v57  ;;  %v1000_v0 = vadd.f32 %v982_v62, %v972_v59  ;;  %v1487_v57 = vld [vmem:[%s2547_s0 + $0x1d8] sm:$0xff] }
 0x197   :  { %1019 = vst [vmem:[%s2550_s3 + $0x160] sm:$0xff] %v1011_v24  ;;  %1020 = vst.msk [vmem:[%s2550_s3 + $0x168] sm:$0xff] %vm22_vm0, %v1012_v63  ;;  %v1007_v9 = vmax.f32 %v999_v39, 0.0  ;;  %v1008_v4 = vmax.f32 %v1000_v0, 0.0  ;;  %v1127_v51 = vpop.permute.xlu0 %1126  ;;  %v1488_v39 = vld [vmem:[%s2547_s0 + $0x1f0] sm:$0xff] }
 0x198   :  { %v997_v7 = vpop.permute.xlu1 %996  ;;  %v1141_v22 = vmul.f32 %v1478_v19, %v1127_v51  ;;  %v1142_v23 = vmul.f32 %v1479_v32, %v1127_v51  ;;  %v1491_v51 = vld [vmem:[%s2547_s0 + $0x1c8] sm:$0xff]  ;;  %v1492_v32 = vld [vmem:[%s2547_s0 + $0x1e0] sm:$0xff] }
 0x199   :  { %1015 = vst [vmem:[%s2550_s3 + $0x140] sm:$0xff] %v1007_v9  ;;  %1016 = vst.msk [vmem:[%s2550_s3 + $0x148] sm:$0xff] %vm22_vm0, %v1008_v4  ;;  %v1005_v13 = vadd.f32 %v997_v7, %v977_v43  ;;  %v1006_v17 = vadd.f32 %v997_v7, %v978_v29  ;;  %v1490_v9 = vld [vmem:[%s2547_s0 + $0x1c0] sm:$0xff] }
 0x19b   :  { %v1013_v18 = vmax.f32 %v1005_v13, 0.0  ;;  %v1014_v15 = vmax.f32 %v1006_v17, 0.0  ;;  %v1137_v16 = vpop.permute.xlu0 %1136 }
 0x19c   :  { %v1122_v36 = vpop.permute.xlu1 %1121  ;;  %v1145_v34 = vmul.f32 %v1484_v46, %v1137_v16  ;;  %v1146_v11 = vmul.f32 %v1485_v49, %v1137_v16 }
 0x19d   :  { %1021 = vst [vmem:[%s2550_s3 + $0x170] sm:$0xff] %v1013_v18  ;;  %1022 = vst.msk [vmem:[%s2550_s3 + $0x178] sm:$0xff] %vm22_vm0, %v1014_v15  ;;  %v1139_v31 = vmul.f32 %v1480_v30, %v1122_v36  ;;  %v1140_v12 = vmul.f32 %v1481_v28, %v1122_v36 }
 0x19f   :  { %v1155_v20 = vpop.permute.xlu0 %1154 }
 0x1a0   :  { %v1132_v5 = vpop.permute.xlu1 %1131  ;;  %v1169_v41 = vadd.f32 %v1155_v20, %v1141_v22  ;;  %v1170_v25 = vadd.f32 %v1155_v20, %v1142_v23  ;;  %v1493_v20 = vld [vmem:[%s2547_s0 + $0x1e8] sm:$0xff] }
 0x1a1   :  { %v1143_v8 = vmul.f32 %v1482_v40, %v1132_v5  ;;  %v1144_v44 = vmul.f32 %v1483_v42, %v1132_v5 }
 0x1a2   :  { %v1177_v50 = vmax.f32 %v1169_v41, 0.0  ;;  %v1178_v14 = vmax.f32 %v1170_v25, 0.0 }
 0x1a3   :  { %v1290_v1 = vpop.permute.xlu0 %1289 }
 0x1a4   :  { %1185 = vst [vmem:[%s2550_s3 + $0x190] sm:$0xff] %v1177_v50  ;;  %1186 = vst.msk [vmem:[%s2550_s3 + $0x198] sm:$0xff] %vm22_vm0, %v1178_v14  ;;  %v1150_v6 = vpop.permute.xlu1 %1149  ;;  %v1307_v4 = vmul.f32 %v1490_v9, %v1290_v1  ;;  %v1308_v7 = vmul.f32 %v1491_v51, %v1290_v1 }
 0x1a5   :  { %v1167_v33 = vadd.f32 %v1150_v6, %v1139_v31  ;;  %v1168_v37 = vadd.f32 %v1150_v6, %v1140_v12 }
 0x1a7   :  { %v1175_v10 = vmax.f32 %v1167_v33, 0.0  ;;  %v1176_v27 = vmax.f32 %v1168_v37, 0.0  ;;  %v1300_v45 = vpop.permute.xlu0 %1299 }
 0x1a8   :  { %v1160_v47 = vpop.permute.xlu1 %1159  ;;  %v1311_v23 = vmul.f32 %v1492_v32, %v1300_v45  ;;  %v1312_v5 = vmul.f32 %v1493_v20, %v1300_v45 }
 0x1a9   :  { %1183 = vst [vmem:[%s2550_s3 + $0x180] sm:$0xff] %v1175_v10  ;;  %1184 = vst.msk [vmem:[%s2550_s3 + $0x188] sm:$0xff] %vm22_vm0, %v1176_v27  ;;  %v1171_v48 = vadd.f32 %v1160_v47, %v1143_v8  ;;  %v1172_v21 = vadd.f32 %v1160_v47, %v1144_v44 }
 0x1ab   :  { %v1179_v35 = vmax.f32 %v1171_v48, 0.0  ;;  %v1180_v38 = vmax.f32 %v1172_v21, 0.0  ;;  %v1165_v3 = vpop.permute.xlu0 %1164 }
 0x1ac   :  { %v1295_v52 = vpop.permute.xlu1 %1294  ;;  %v1173_v53 = vadd.f32 %v1165_v3, %v1145_v34  ;;  %v1174_v54 = vadd.f32 %v1165_v3, %v1146_v11 }
 0x1ad   :  { %1187 = vst [vmem:[%s2550_s3 + $0x1a0] sm:$0xff] %v1179_v35  ;;  %1188 = vst.msk [vmem:[%s2550_s3 + $0x1a8] sm:$0xff] %vm22_vm0, %v1180_v38  ;;  %v1309_v56 = vmul.f32 %v1486_v55, %v1295_v52  ;;  %v1310_v58 = vmul.f32 %v1487_v57, %v1295_v52 }
 0x1ae   :  { %v1181_v59 = vmax.f32 %v1173_v53, 0.0  ;;  %v1182_v60 = vmax.f32 %v1174_v54, 0.0 }
 0x1af   :  { %v1323_v61 = vpop.permute.xlu0 %1322 }
 0x1b0   :  { %1189 = vst [vmem:[%s2550_s3 + $0x1b0] sm:$0xff] %v1181_v59  ;;  %1190 = vst.msk [vmem:[%s2550_s3 + $0x1b8] sm:$0xff] %vm22_vm0, %v1182_v60  ;;  %v1305_v62 = vpop.permute.xlu1 %1304  ;;  %v1337_v24 = vadd.f32 %v1323_v61, %v1309_v56  ;;  %v1338_v63 = vadd.f32 %v1323_v61, %v1310_v58 }
 0x1b1   :  { %v1313_v0 = vmul.f32 %v1488_v39, %v1305_v62  ;;  %v1314_v43 = vmul.f32 %v1489_v26, %v1305_v62 }
 0x1b2   :  { %v1345_v2 = vmax.f32 %v1337_v24, 0.0  ;;  %v1346_v29 = vmax.f32 %v1338_v63, 0.0 }
 0x1b3   :  { %v1333_v13 = vpop.permute.xlu0 %1332 }
 0x1b4   :  { %1353 = vst [vmem:[%s2550_s3 + $0x1d0] sm:$0xff] %v1345_v2  ;;  %1354 = vst.msk [vmem:[%s2550_s3 + $0x1d8] sm:$0xff] %vm22_vm0, %v1346_v29  ;;  %v1318_v17 = vpop.permute.xlu1 %1317  ;;  %v1341_v18 = vadd.f32 %v1333_v13, %v1313_v0  ;;  %v1342_v15 = vadd.f32 %v1333_v13, %v1314_v43 }
 0x1b5   :  { %v1335_v16 = vadd.f32 %v1318_v17, %v1307_v4  ;;  %v1336_v36 = vadd.f32 %v1318_v17, %v1308_v7 }
 0x1b6   :  { %v1349_v19 = vmax.f32 %v1341_v18, 0.0  ;;  %v1350_v22 = vmax.f32 %v1342_v15, 0.0 }
 0x1b7   :  { %v1343_v41 = vmax.f32 %v1335_v16, 0.0  ;;  %v1344_v25 = vmax.f32 %v1336_v36, 0.0 }
 0x1b8   :  { %1357 = vst [vmem:[%s2550_s3 + $0x1f0] sm:$0xff] %v1349_v19  ;;  %1358 = vst.msk [vmem:[%s2550_s3 + $0x1f8] sm:$0xff] %vm22_vm0, %v1350_v22  ;;  %v1328_v50 = vpop.permute.xlu1 %1327 }
 0x1b9   :  { %1351 = vst [vmem:[%s2550_s3 + $0x1c0] sm:$0xff] %v1343_v41  ;;  %1352 = vst.msk [vmem:[%s2550_s3 + $0x1c8] sm:$0xff] %vm22_vm0, %v1344_v25  ;;  %v1339_v14 = vadd.f32 %v1328_v50, %v1311_v23  ;;  %v1340_v30 = vadd.f32 %v1328_v50, %v1312_v5 }
 0x1bb   :  { %v1347_v31 = vmax.f32 %v1339_v14, 0.0  ;;  %v1348_v28 = vmax.f32 %v1340_v30, 0.0 }
 0x1bd   :  { %1355 = vst [vmem:[%s2550_s3 + $0x1e0] sm:$0xff] %v1347_v31  ;;  %1356 = vst.msk [vmem:[%s2550_s3 + $0x1e8] sm:$0xff] %vm22_vm0, %v1348_v28 }

</bundles_post_ra>
